<compile_context>
chip_gen: v7x
topology: tpu7x:2x2x1
jax: 0.10.0
libtpu: 0.0.40
codegen_flags: <defaults>
</compile_context>

<pallas_src>
import functools

import jax
import jax.numpy as jnp
from jax.experimental import pallas as pl
from jax.experimental.pallas import tpu as pltpu


# ----------------------------------------------------------------------------
# Fused whole-forward Pallas kernel.  Grid = (B, n_layers):
#   b (parallel)  : one batch element per grid column -> megacore split on v7x
#   l (arbitrary) : transformer layers, carried through x_scr
# ----------------------------------------------------------------------------
def _together3_kernel(
    # inputs -------------------------------------------------------------
    patches_ref,             # (1, S_img, C*patch*patch)   (this batch's patches)
    label_ref,               # (num_labels, H)
    conv_w_ref, conv_b_ref,  # (CKK, H), (1, H)
    ln_g_ref, ln_b_ref,      # (1, H), (1, H)
    wqkv_ref, bqkv_ref,      # (1, H, 3H), (1, 1, 3H)      (layer l slice)
    wo_ref, bo_ref,          # (1, H, H),  (1, 1, H)
    ln1_g_ref, ln1_b_ref,    # (1, 1, H)
    wff1_ref, bff1_ref,      # (1, H, H),  (1, 1, H)
    wff2_ref, bff2_ref,      # (1, H, H),  (1, 1, H)
    ln2_g_ref, ln2_b_ref,    # (1, 1, H)
    gwl_w_ref, gwl_b_ref,    # (num_labels, H), (num_labels, 1)
    # outputs ------------------------------------------------------------
    out_ref,                 # (1, num_labels, 1)          (batch b logits)
    attn_ref,                # (1, 1, S, S)                (layer l, batch b)
    # scratch ------------------------------------------------------------
    x_scr,                   # VMEM (S, H) -- activation carry across layers
    *, S_img, num_labels, heads, n_layers, hidden):

    H = hidden
    dh = H // heads
    S = S_img + num_labels
    scale = 1.0 / float(dh) ** 0.5
    l = pl.program_id(1)

    def layernorm(v, g, b):
        mu = jnp.mean(v, axis=-1, keepdims=True)
        vc = v - mu
        var = jnp.mean(vc * vc, axis=-1, keepdims=True)
        return vc * jax.lax.rsqrt(var + 1e-5) * g + b

    # --- layer 0: backbone conv-as-matmul + ReLU, concat, initial LN -------
    @pl.when(l == 0)
    def _init():
        feat = jnp.dot(patches_ref[0], conv_w_ref[...],
                       preferred_element_type=jnp.float32) + conv_b_ref[...]
        feat = jnp.maximum(feat, 0.0)                           # (S_img, H)
        x0 = jnp.concatenate([feat, label_ref[...]], axis=0)    # (S, H)
        x_scr[...] = layernorm(x0, ln_g_ref[...], ln_b_ref[...])

    x = x_scr[...]                                              # (S, H)

    # --- fused QKV projection: one (S,H) x (H,3H) matmul --------------------
    qkv = jnp.dot(x, wqkv_ref[0],
                  preferred_element_type=jnp.float32) + bqkv_ref[0]   # (S, 3H)

    p_sum = jnp.zeros((S, S), jnp.float32)      # head-averaged attn accumulator
    o_heads = []
    for h in range(heads):                      # static, tiny unroll (4 heads)
        qh = qkv[:,            h * dh:(h + 1) * dh]             # (S, dh)
        kh = qkv[:,     H +    h * dh: H + (h + 1) * dh]        # (S, dh)
        vh = qkv[:, 2 * H +    h * dh: 2 * H + (h + 1) * dh]    # (S, dh)

        # scores = q @ k^T, contraction on trailing dims (no explicit transpose)
        s = jax.lax.dot_general(qh, kh, (((1,), (1,)), ((), ())),
                                preferred_element_type=jnp.float32) * scale
        s = s - jnp.max(s, axis=-1, keepdims=True)
        e = jnp.exp(s)
        p = e / jnp.sum(e, axis=-1, keepdims=True)              # exact softmax
        p_sum = p_sum + p

        o_heads.append(jnp.dot(p, vh, preferred_element_type=jnp.float32))

    # head-averaged attention weights (matches average_attn_weights=True)
    attn_ref[0, 0] = p_sum * (1.0 / heads)

    # --- fused output projection: lane-concat heads, one K=H matmul ---------
    o_cat = jnp.concatenate(o_heads, axis=-1)                   # (S, H)
    attn_out = jnp.dot(o_cat, wo_ref[0],
                       preferred_element_type=jnp.float32) + bo_ref[0]

    x = layernorm(x + attn_out, ln1_g_ref[0], ln1_b_ref[0])

    # --- feed-forward (ffn dim = hidden, ReLU), post-norm -------------------
    ff = jnp.dot(x, wff1_ref[0],
                 preferred_element_type=jnp.float32) + bff1_ref[0]
    ff = jnp.maximum(ff, 0.0)
    ff = jnp.dot(ff, wff2_ref[0],
                 preferred_element_type=jnp.float32) + bff2_ref[0]
    x = layernorm(x + ff, ln2_g_ref[0], ln2_b_ref[0])

    x_scr[...] = x                                              # layer carry

    # --- final layer: GroupWiseLinear on trailing num_labels tokens ---------
    @pl.when(l == n_layers - 1)
    def _final():
        lab_emb = x[S_img:, :]                                  # (num_labels, H)
        logits = jnp.sum(lab_emb * gwl_w_ref[...], axis=-1,
                         keepdims=True) + gwl_b_ref[...]        # (num_labels, 1)
        out_ref[0] = logits


# ----------------------------------------------------------------------------
# Wrapper: im2col layout plumbing + single fused pallas_call
# ----------------------------------------------------------------------------
@functools.partial(jax.jit, static_argnames=("num_labels", "heads", "patch"))
def together3_forward(params, images, mask, img_loc, month, loc_num, *,
                      num_labels, heads, patch=4):
    # use_lmt / use_month / use_loc are False -> mask, img_loc, month, loc_num
    # are accepted for signature parity but unused.
    del mask, img_loc, month, loc_num

    B, C, Himg, Wimg = images.shape
    Hf, Wf = Himg // patch, Wimg // patch
    S_img = Hf * Wf
    hidden = params["conv_w"].shape[1]
    n_layers = params["w_ff1"].shape[0]
    S = S_img + num_labels
    CKK = C * patch * patch

    # im2col patch extraction (layout only; the conv matmul is in-kernel).
    x = images.reshape(B, C, Hf, patch, Wf, patch)
    x = x.transpose(0, 2, 4, 1, 3, 5)                   # (B, Hf, Wf, C, k, k)
    patches = x.reshape(B, S_img, CKK)

    inputs = (patches, params["label_emb"],
              params["conv_w"], params["conv_b"],
              params["ln_g"], params["ln_b"],
              params["wqkv"], params["bqkv"],
              params["wo"], params["bo"],
              params["ln1_g"], params["ln1_b"],
              params["w_ff1"], params["b_ff1"],
              params["w_ff2"], params["b_ff2"],
              params["ln2_g"], params["ln2_b"],
              params["gwl_w"], params["gwl_b"])

    kernel = functools.partial(
        _together3_kernel, S_img=S_img, num_labels=num_labels,
        heads=heads, n_layers=n_layers, hidden=hidden)

    in_specs = [
        pl.BlockSpec((1, S_img, CKK),        lambda b, l: (b, 0, 0)),  # patches
        pl.BlockSpec((num_labels, hidden),   lambda b, l: (0, 0)),     # label_emb
        pl.BlockSpec((CKK, hidden),          lambda b, l: (0, 0)),     # conv_w
        pl.BlockSpec((1, hidden),            lambda b, l: (0, 0)),     # conv_b
        pl.BlockSpec((1, hidden),            lambda b, l: (0, 0)),     # ln_g
        pl.BlockSpec((1, hidden),            lambda b, l: (0, 0)),     # ln_b
        pl.BlockSpec((1, hidden, 3 * hidden), lambda b, l: (l, 0, 0)), # wqkv
        pl.BlockSpec((1, 1, 3 * hidden),     lambda b, l: (l, 0, 0)),  # bqkv
        pl.BlockSpec((1, hidden, hidden),    lambda b, l: (l, 0, 0)),  # wo
        pl.BlockSpec((1, 1, hidden),         lambda b, l: (l, 0, 0)),  # bo
        pl.BlockSpec((1, 1, hidden),         lambda b, l: (l, 0, 0)),  # ln1_g
        pl.BlockSpec((1, 1, hidden),         lambda b, l: (l, 0, 0)),  # ln1_b
        pl.BlockSpec((1, hidden, hidden),    lambda b, l: (l, 0, 0)),  # w_ff1
        pl.BlockSpec((1, 1, hidden),         lambda b, l: (l, 0, 0)),  # b_ff1
        pl.BlockSpec((1, hidden, hidden),    lambda b, l: (l, 0, 0)),  # w_ff2
        pl.BlockSpec((1, 1, hidden),         lambda b, l: (l, 0, 0)),  # b_ff2
        pl.BlockSpec((1, 1, hidden),         lambda b, l: (l, 0, 0)),  # ln2_g
        pl.BlockSpec((1, 1, hidden),         lambda b, l: (l, 0, 0)),  # ln2_b
        pl.BlockSpec((num_labels, hidden),   lambda b, l: (0, 0)),     # gwl_w
        pl.BlockSpec((num_labels, 1),        lambda b, l: (0, 0)),     # gwl_b
    ]
    out_specs = (
        pl.BlockSpec((1, num_labels, 1), lambda b, l: (b, 0, 0)),
        pl.BlockSpec((1, 1, S, S),       lambda b, l: (l, b, 0, 0)),
    )
    out_shapes = (
        jax.ShapeDtypeStruct((B, num_labels, 1), jnp.float32),
        jax.ShapeDtypeStruct((n_layers, B, S, S), jnp.float32),
    )

    out3, attn_all = pl.pallas_call(
        kernel,
        out_shape=out_shapes,
        grid=(B, n_layers),
        in_specs=in_specs,
        out_specs=out_specs,
        scratch_shapes=[pltpu.VMEM((S, hidden), jnp.float32)],
        compiler_params=pltpu.CompilerParams(
            dimension_semantics=("parallel", "arbitrary")),
    )(*inputs)

    output = out3[:, :, 0]                          # (B, num_labels)
    attns = [attn_all[l] for l in range(n_layers)]  # list of (B, S, S)
    month_out = None   # self.use_month == False
    loc_out = None     # self.use_loc == False
    return output, None, attns, month_out, loc_out


# ----------------------------------------------------------------------------
# Deterministic parameter construction (fused-QKV weight layout)
# ----------------------------------------------------------------------------
def make_params(key, hidden, num_labels, in_ch, patch, layers, heads):
    del heads  # head split is done by static slicing inside the kernel

    def nrm(k, shape, scale=0.05):
        return scale * jax.random.normal(k, shape, dtype=jnp.float32)

    keys = iter(jax.random.split(key, 16))
    params = {
        "label_emb": nrm(next(keys), (num_labels, hidden)),
        "conv_w": nrm(next(keys), (in_ch * patch * patch, hidden)),
        "conv_b": nrm(next(keys), (1, hidden)),
        "ln_g": jnp.ones((1, hidden), jnp.float32),
        "ln_b": jnp.zeros((1, hidden), jnp.float32),
        # fused attention projections: Q|K|V packed along the output axis
        "wqkv": nrm(next(keys), (layers, hidden, 3 * hidden)),
        "bqkv": nrm(next(keys), (layers, 1, 3 * hidden)),
        "wo": nrm(next(keys), (layers, hidden, hidden)),
        "bo": nrm(next(keys), (layers, 1, hidden)),
        "ln1_g": jnp.ones((layers, 1, hidden), jnp.float32),
        "ln1_b": jnp.zeros((layers, 1, hidden), jnp.float32),
        "w_ff1": nrm(next(keys), (layers, hidden, hidden)),  # ffn dim = hidden
        "b_ff1": nrm(next(keys), (layers, 1, hidden)),
        "w_ff2": nrm(next(keys), (layers, hidden, hidden)),
        "b_ff2": nrm(next(keys), (layers, 1, hidden)),
        "ln2_g": jnp.ones((layers, 1, hidden), jnp.float32),
        "ln2_b": jnp.zeros((layers, 1, hidden), jnp.float32),
        "gwl_w": nrm(next(keys), (num_labels, hidden)),
        "gwl_b": nrm(next(keys), (num_labels, 1)),
    }
    return params


# ----------------------------------------------------------------------------
if __name__ == "__main__":
    B, C, HW = 2, 3, 16
    hidden, num_labels, heads, n_layers, patch = 32, 8, 4, 3, 4
    S = (HW // patch) * (HW // patch) + num_labels

    key = jax.random.PRNGKey(0)
    k_img, k_par = jax.random.split(key)

    images = jax.random.normal(k_img, (B, C, HW, HW), dtype=jnp.float32)  # NCHW
    mask = jnp.zeros((B, num_labels), jnp.int32)      # unused (use_lmt=False)
    img_loc = jnp.zeros((2, B), jnp.int32)            # unused
    month = jnp.zeros((B,), jnp.int32)                # unused (use_month=False)
    loc_num = jnp.zeros((B,), jnp.int32)              # unused (use_loc=False)

    params = make_params(k_par, hidden, num_labels, C, patch, n_layers, heads)

    output, _none, attns, month_out, loc_out = together3_forward(
        params, images, mask, img_loc, month, loc_num,
        num_labels=num_labels, heads=heads, patch=patch)

    jax.block_until_ready(output)
    for a in attns:
        jax.block_until_ready(a)

    assert output.shape == (B, num_labels)
    assert len(attns) == n_layers
    assert attns[0].shape == (B, S, S)
    assert _none is None and month_out is None and loc_out is None
    assert bool(jnp.all(jnp.isfinite(output)))
    # TODO(synk): CNN(3) and SelfAttnLayer sources are not in the prompt;
    # backbone is a synthetic patchify conv (k=s=4) + ReLU and the attention
    # layer follows the public C-Tran implementation (post-norm, ffn=hidden,
    # ReLU, head-averaged attention weights).
    print("KERNEL_OK")
</pallas_src>

<mosaic_0001>
module attributes {stable_mosaic.version = 11 : i64} {
  func.func @_together3_kernel(%arg0: i32, %arg1: i32, %arg2: memref<1x16x48xf32, #tpu.memory_space<vmem>>, %arg3: memref<8x32xf32, #tpu.memory_space<vmem>>, %arg4: memref<48x32xf32, #tpu.memory_space<vmem>>, %arg5: memref<1x32xf32, #tpu.memory_space<vmem>>, %arg6: memref<1x32xf32, #tpu.memory_space<vmem>>, %arg7: memref<1x32xf32, #tpu.memory_space<vmem>>, %arg8: memref<1x32x96xf32, #tpu.memory_space<vmem>>, %arg9: memref<1x1x96xf32, #tpu.memory_space<vmem>>, %arg10: memref<1x32x32xf32, #tpu.memory_space<vmem>>, %arg11: memref<1x1x32xf32, #tpu.memory_space<vmem>>, %arg12: memref<1x1x32xf32, #tpu.memory_space<vmem>>, %arg13: memref<1x1x32xf32, #tpu.memory_space<vmem>>, %arg14: memref<1x32x32xf32, #tpu.memory_space<vmem>>, %arg15: memref<1x1x32xf32, #tpu.memory_space<vmem>>, %arg16: memref<1x32x32xf32, #tpu.memory_space<vmem>>, %arg17: memref<1x1x32xf32, #tpu.memory_space<vmem>>, %arg18: memref<1x1x32xf32, #tpu.memory_space<vmem>>, %arg19: memref<1x1x32xf32, #tpu.memory_space<vmem>>, %arg20: memref<8x32xf32, #tpu.memory_space<vmem>>, %arg21: memref<8x1xf32, #tpu.memory_space<vmem>>, %arg22: memref<1x8x1xf32, #tpu.memory_space<vmem>>, %arg23: memref<1x1x24x24xf32, #tpu.memory_space<vmem>>, %arg24: memref<24x32xf32, #tpu.memory_space<vmem>>) attributes {dimension_semantics = [#tpu.dimension_semantics<parallel>, #tpu.dimension_semantics<arbitrary>], iteration_bounds = array<i64: 2, 3>, scalar_prefetch = 0 : i64, scratch_operands = 1 : i64, tpu.core_type = #tpu.core_type<tc>, window_params = [{transform_indices = @transform_0, window_bounds = array<i64: 1, 16, 48>}, {pipeline_mode = #tpu.pipeline_mode<synchronous>, transform_indices = @transform_1, window_bounds = array<i64: 8, 32>}, {pipeline_mode = #tpu.pipeline_mode<synchronous>, transform_indices = @transform_2, window_bounds = array<i64: 48, 32>}, {pipeline_mode = #tpu.pipeline_mode<synchronous>, transform_indices = @transform_3, window_bounds = array<i64: 1, 32>}, {pipeline_mode = #tpu.pipeline_mode<synchronous>, transform_indices = @transform_4, window_bounds = array<i64: 1, 32>}, {pipeline_mode = #tpu.pipeline_mode<synchronous>, transform_indices = @transform_5, window_bounds = array<i64: 1, 32>}, {transform_indices = @transform_6, window_bounds = array<i64: 1, 32, 96>}, {transform_indices = @transform_7, window_bounds = array<i64: 1, 1, 96>}, {transform_indices = @transform_8, window_bounds = array<i64: 1, 32, 32>}, {transform_indices = @transform_9, window_bounds = array<i64: 1, 1, 32>}, {transform_indices = @transform_10, window_bounds = array<i64: 1, 1, 32>}, {transform_indices = @transform_11, window_bounds = array<i64: 1, 1, 32>}, {transform_indices = @transform_12, window_bounds = array<i64: 1, 32, 32>}, {transform_indices = @transform_13, window_bounds = array<i64: 1, 1, 32>}, {transform_indices = @transform_14, window_bounds = array<i64: 1, 32, 32>}, {transform_indices = @transform_15, window_bounds = array<i64: 1, 1, 32>}, {transform_indices = @transform_16, window_bounds = array<i64: 1, 1, 32>}, {transform_indices = @transform_17, window_bounds = array<i64: 1, 1, 32>}, {pipeline_mode = #tpu.pipeline_mode<synchronous>, transform_indices = @transform_18, window_bounds = array<i64: 8, 32>}, {pipeline_mode = #tpu.pipeline_mode<synchronous>, transform_indices = @transform_19, window_bounds = array<i64: 8, 1>}, {transform_indices = @transform_20, window_bounds = array<i64: 1, 8, 1>}, {transform_indices = @transform_21, window_bounds = array<i64: 1, 1, 24, 24>}]} {
    %c0_i32 = arith.constant 0 : i32
    %0 = arith.cmpi eq, %arg1, %c0_i32 : i32
    %1 = arith.extui %0 : i1 to i32
    %c0_i32_0 = arith.constant 0 : i32
    %2 = arith.cmpi ne, %1, %c0_i32_0 : i32
    scf.if %2 {
      %c0_81 = arith.constant 0 : index
      %c0_82 = arith.constant 0 : index
      %c0_83 = arith.constant 0 : index
      %163 = vector.load %arg2[%c0_81, %c0_82, %c0_83] : memref<1x16x48xf32, #tpu.memory_space<vmem>>, vector<1x16x48xf32>
      %164 = vector.shape_cast %163 : vector<1x16x48xf32> to vector<16x48xf32>
      %c0_84 = arith.constant 0 : index
      %c0_85 = arith.constant 0 : index
      %165 = vector.load %arg4[%c0_84, %c0_85] : memref<48x32xf32, #tpu.memory_space<vmem>>, vector<48x32xf32>
      %cst_86 = arith.constant dense<0.000000e+00> : vector<16x32xf32>
      %166 = tpu.matmul %164, %165, %cst_86 {dimension_numbers = #tpu.dot_dimension_numbers<[1], [0], [0], [1], [0, 0, 1, 1], [], []>} : vector<16x48xf32>, vector<48x32xf32>, vector<16x32xf32> -> vector<16x32xf32>
      %c0_87 = arith.constant 0 : index
      %c0_88 = arith.constant 0 : index
      %167 = vector.load %arg5[%c0_87, %c0_88] : memref<1x32xf32, #tpu.memory_space<vmem>>, vector<1x32xf32>
      %168 = vector.broadcast %167 : vector<1x32xf32> to vector<16x32xf32>
      %169 = arith.addf %166, %168 : vector<16x32xf32>
      %cst_89 = arith.constant 0.000000e+00 : f32
      %170 = vector.broadcast %cst_89 : f32 to vector<16x32xf32>
      %171 = arith.maximumf %169, %170 : vector<16x32xf32>
      %c0_90 = arith.constant 0 : index
      %c0_91 = arith.constant 0 : index
      %172 = vector.load %arg3[%c0_90, %c0_91] : memref<8x32xf32, #tpu.memory_space<vmem>>, vector<8x32xf32>
      %173 = tpu.concatenate %171, %172 in 0 : vector<16x32xf32>, vector<8x32xf32> -> vector<24x32xf32>
      %c0_92 = arith.constant 0 : index
      %c0_93 = arith.constant 0 : index
      %174 = vector.load %arg6[%c0_92, %c0_93] : memref<1x32xf32, #tpu.memory_space<vmem>>, vector<1x32xf32>
      %c0_94 = arith.constant 0 : index
      %c0_95 = arith.constant 0 : index
      %175 = vector.load %arg7[%c0_94, %c0_95] : memref<1x32xf32, #tpu.memory_space<vmem>>, vector<1x32xf32>
      %cst_96 = arith.constant dense<0.000000e+00> : vector<24xf32>
      %176 = vector.multi_reduction <add>, %173, %cst_96 [1] : vector<24x32xf32> to vector<24xf32>
      %177 = vector.shape_cast %176 : vector<24xf32> to vector<24x1xf32>
      %cst_97 = arith.constant 3.200000e+01 : f32
      %178 = vector.broadcast %cst_97 : f32 to vector<24x1xf32>
      %179 = arith.divf %177, %178 : vector<24x1xf32>
      %180 = vector.broadcast %179 : vector<24x1xf32> to vector<24x32xf32>
      %181 = arith.subf %173, %180 : vector<24x32xf32>
      %182 = arith.mulf %181, %181 : vector<24x32xf32>
      %cst_98 = arith.constant dense<0.000000e+00> : vector<24xf32>
      %183 = vector.multi_reduction <add>, %182, %cst_98 [1] : vector<24x32xf32> to vector<24xf32>
      %184 = vector.shape_cast %183 : vector<24xf32> to vector<24x1xf32>
      %cst_99 = arith.constant 3.200000e+01 : f32
      %185 = vector.broadcast %cst_99 : f32 to vector<24x1xf32>
      %186 = arith.divf %184, %185 : vector<24x1xf32>
      %cst_100 = arith.constant 9.99999974E-6 : f32
      %187 = vector.broadcast %cst_100 : f32 to vector<24x1xf32>
      %188 = arith.addf %186, %187 : vector<24x1xf32>
      %189 = math.rsqrt %188 : vector<24x1xf32>
      %190 = vector.broadcast %189 : vector<24x1xf32> to vector<24x32xf32>
      %191 = arith.mulf %181, %190 : vector<24x32xf32>
      %192 = vector.broadcast %174 : vector<1x32xf32> to vector<24x32xf32>
      %193 = arith.mulf %191, %192 : vector<24x32xf32>
      %194 = vector.broadcast %175 : vector<1x32xf32> to vector<24x32xf32>
      %195 = arith.addf %193, %194 : vector<24x32xf32>
      %c0_101 = arith.constant 0 : index
      %c0_102 = arith.constant 0 : index
      %196 = vector.load %arg24[%c0_101, %c0_102] : memref<24x32xf32, #tpu.memory_space<vmem>>, vector<24x32xf32>
      tpu.vector_store %arg24[%c0_101, %c0_102], %195 {strides = array<i32>} : memref<24x32xf32, #tpu.memory_space<vmem>>, vector<24x32xf32>,
    } else {
    }
    %c0 = arith.constant 0 : index
    %c0_1 = arith.constant 0 : index
    %3 = vector.load %arg24[%c0, %c0_1] : memref<24x32xf32, #tpu.memory_space<vmem>>, vector<24x32xf32>
    %c0_2 = arith.constant 0 : index
    %c0_3 = arith.constant 0 : index
    %c0_4 = arith.constant 0 : index
    %4 = vector.load %arg8[%c0_2, %c0_3, %c0_4] : memref<1x32x96xf32, #tpu.memory_space<vmem>>, vector<1x32x96xf32>
    %5 = vector.shape_cast %4 : vector<1x32x96xf32> to vector<32x96xf32>
    %cst = arith.constant dense<0.000000e+00> : vector<24x96xf32>
    %6 = tpu.matmul %3, %5, %cst {dimension_numbers = #tpu.dot_dimension_numbers<[1], [0], [0], [1], [0, 0, 1, 1], [], []>} : vector<24x32xf32>, vector<32x96xf32>, vector<24x96xf32> -> vector<24x96xf32>
    %c0_5 = arith.constant 0 : index
    %c0_6 = arith.constant 0 : index
    %c0_7 = arith.constant 0 : index
    %7 = vector.load %arg9[%c0_5, %c0_6, %c0_7] : memref<1x1x96xf32, #tpu.memory_space<vmem>>, vector<1x1x96xf32>
    %8 = vector.shape_cast %7 : vector<1x1x96xf32> to vector<1x96xf32>
    %9 = vector.broadcast %8 : vector<1x96xf32> to vector<24x96xf32>
    %10 = arith.addf %6, %9 : vector<24x96xf32>
    %cst_8 = arith.constant 0.000000e+00 : f32
    %11 = vector.broadcast %cst_8 : f32 to vector<24x24xf32>
    %12 = vector.extract_strided_slice %10 {offsets = [0, 0], sizes = [24, 8], strides = [1, 1]} : vector<24x96xf32> to vector<24x8xf32>
    %13 = vector.extract_strided_slice %10 {offsets = [0, 32], sizes = [24, 8], strides = [1, 1]} : vector<24x96xf32> to vector<24x8xf32>
    %14 = vector.extract_strided_slice %10 {offsets = [0, 64], sizes = [24, 8], strides = [1, 1]} : vector<24x96xf32> to vector<24x8xf32>
    %cst_9 = arith.constant dense<0.000000e+00> : vector<24x24xf32>
    %15 = tpu.matmul %12, %13, %cst_9 {dimension_numbers = #tpu.dot_dimension_numbers<[1], [1], [0], [0], [0, 0, 1, 0], [], []>} : vector<24x8xf32>, vector<24x8xf32>, vector<24x24xf32> -> vector<24x24xf32>
    %cst_10 = arith.constant 0.353553385 : f32
    %16 = vector.broadcast %cst_10 : f32 to vector<24x24xf32>
    %17 = arith.mulf %15, %16 : vector<24x24xf32>
    %cst_11 = arith.constant dense<0xFF800000> : vector<24xf32>
    %18 = vector.multi_reduction <maximumf>, %17, %cst_11 [1] : vector<24x24xf32> to vector<24xf32>
    %19 = vector.shape_cast %18 : vector<24xf32> to vector<24x1xf32>
    %20 = vector.broadcast %19 : vector<24x1xf32> to vector<24x24xf32>
    %21 = arith.subf %17, %20 : vector<24x24xf32>
    %22 = math.exp %21 : vector<24x24xf32>
    %cst_12 = arith.constant dense<0.000000e+00> : vector<24xf32>
    %23 = vector.multi_reduction <add>, %22, %cst_12 [1] : vector<24x24xf32> to vector<24xf32>
    %24 = vector.shape_cast %23 : vector<24xf32> to vector<24x1xf32>
    %25 = vector.broadcast %24 : vector<24x1xf32> to vector<24x24xf32>
    %26 = arith.divf %22, %25 : vector<24x24xf32>
    %27 = arith.addf %11, %26 : vector<24x24xf32>
    %cst_13 = arith.constant dense<0.000000e+00> : vector<24x8xf32>
    %28 = tpu.matmul %26, %14, %cst_13 {dimension_numbers = #tpu.dot_dimension_numbers<[1], [0], [0], [1], [0, 0, 1, 1], [], []>} : vector<24x24xf32>, vector<24x8xf32>, vector<24x8xf32> -> vector<24x8xf32>
    %29 = vector.extract_strided_slice %10 {offsets = [0, 8], sizes = [24, 8], strides = [1, 1]} : vector<24x96xf32> to vector<24x8xf32>
    %30 = vector.extract_strided_slice %10 {offsets = [0, 40], sizes = [24, 8], strides = [1, 1]} : vector<24x96xf32> to vector<24x8xf32>
    %31 = vector.extract_strided_slice %10 {offsets = [0, 72], sizes = [24, 8], strides = [1, 1]} : vector<24x96xf32> to vector<24x8xf32>
    %cst_14 = arith.constant dense<0.000000e+00> : vector<24x24xf32>
    %32 = tpu.matmul %29, %30, %cst_14 {dimension_numbers = #tpu.dot_dimension_numbers<[1], [1], [0], [0], [0, 0, 1, 0], [], []>} : vector<24x8xf32>, vector<24x8xf32>, vector<24x24xf32> -> vector<24x24xf32>
    %cst_15 = arith.constant 0.353553385 : f32
    %33 = vector.broadcast %cst_15 : f32 to vector<24x24xf32>
    %34 = arith.mulf %32, %33 : vector<24x24xf32>
    %cst_16 = arith.constant dense<0xFF800000> : vector<24xf32>
    %35 = vector.multi_reduction <maximumf>, %34, %cst_16 [1] : vector<24x24xf32> to vector<24xf32>
    %36 = vector.shape_cast %35 : vector<24xf32> to vector<24x1xf32>
    %37 = vector.broadcast %36 : vector<24x1xf32> to vector<24x24xf32>
    %38 = arith.subf %34, %37 : vector<24x24xf32>
    %39 = math.exp %38 : vector<24x24xf32>
    %cst_17 = arith.constant dense<0.000000e+00> : vector<24xf32>
    %40 = vector.multi_reduction <add>, %39, %cst_17 [1] : vector<24x24xf32> to vector<24xf32>
    %41 = vector.shape_cast %40 : vector<24xf32> to vector<24x1xf32>
    %42 = vector.broadcast %41 : vector<24x1xf32> to vector<24x24xf32>
    %43 = arith.divf %39, %42 : vector<24x24xf32>
    %44 = arith.addf %27, %43 : vector<24x24xf32>
    %cst_18 = arith.constant dense<0.000000e+00> : vector<24x8xf32>
    %45 = tpu.matmul %43, %31, %cst_18 {dimension_numbers = #tpu.dot_dimension_numbers<[1], [0], [0], [1], [0, 0, 1, 1], [], []>} : vector<24x24xf32>, vector<24x8xf32>, vector<24x8xf32> -> vector<24x8xf32>
    %46 = vector.extract_strided_slice %10 {offsets = [0, 16], sizes = [24, 8], strides = [1, 1]} : vector<24x96xf32> to vector<24x8xf32>
    %47 = vector.extract_strided_slice %10 {offsets = [0, 48], sizes = [24, 8], strides = [1, 1]} : vector<24x96xf32> to vector<24x8xf32>
    %48 = vector.extract_strided_slice %10 {offsets = [0, 80], sizes = [24, 8], strides = [1, 1]} : vector<24x96xf32> to vector<24x8xf32>
    %cst_19 = arith.constant dense<0.000000e+00> : vector<24x24xf32>
    %49 = tpu.matmul %46, %47, %cst_19 {dimension_numbers = #tpu.dot_dimension_numbers<[1], [1], [0], [0], [0, 0, 1, 0], [], []>} : vector<24x8xf32>, vector<24x8xf32>, vector<24x24xf32> -> vector<24x24xf32>
    %cst_20 = arith.constant 0.353553385 : f32
    %50 = vector.broadcast %cst_20 : f32 to vector<24x24xf32>
    %51 = arith.mulf %49, %50 : vector<24x24xf32>
    %cst_21 = arith.constant dense<0xFF800000> : vector<24xf32>
    %52 = vector.multi_reduction <maximumf>, %51, %cst_21 [1] : vector<24x24xf32> to vector<24xf32>
    %53 = vector.shape_cast %52 : vector<24xf32> to vector<24x1xf32>
    %54 = vector.broadcast %53 : vector<24x1xf32> to vector<24x24xf32>
    %55 = arith.subf %51, %54 : vector<24x24xf32>
    %56 = math.exp %55 : vector<24x24xf32>
    %cst_22 = arith.constant dense<0.000000e+00> : vector<24xf32>
    %57 = vector.multi_reduction <add>, %56, %cst_22 [1] : vector<24x24xf32> to vector<24xf32>
    %58 = vector.shape_cast %57 : vector<24xf32> to vector<24x1xf32>
    %59 = vector.broadcast %58 : vector<24x1xf32> to vector<24x24xf32>
    %60 = arith.divf %56, %59 : vector<24x24xf32>
    %61 = arith.addf %44, %60 : vector<24x24xf32>
    %cst_23 = arith.constant dense<0.000000e+00> : vector<24x8xf32>
    %62 = tpu.matmul %60, %48, %cst_23 {dimension_numbers = #tpu.dot_dimension_numbers<[1], [0], [0], [1], [0, 0, 1, 1], [], []>} : vector<24x24xf32>, vector<24x8xf32>, vector<24x8xf32> -> vector<24x8xf32>
    %63 = vector.extract_strided_slice %10 {offsets = [0, 24], sizes = [24, 8], strides = [1, 1]} : vector<24x96xf32> to vector<24x8xf32>
    %64 = vector.extract_strided_slice %10 {offsets = [0, 56], sizes = [24, 8], strides = [1, 1]} : vector<24x96xf32> to vector<24x8xf32>
    %65 = vector.extract_strided_slice %10 {offsets = [0, 88], sizes = [24, 8], strides = [1, 1]} : vector<24x96xf32> to vector<24x8xf32>
    %cst_24 = arith.constant dense<0.000000e+00> : vector<24x24xf32>
    %66 = tpu.matmul %63, %64, %cst_24 {dimension_numbers = #tpu.dot_dimension_numbers<[1], [1], [0], [0], [0, 0, 1, 0], [], []>} : vector<24x8xf32>, vector<24x8xf32>, vector<24x24xf32> -> vector<24x24xf32>
    %cst_25 = arith.constant 0.353553385 : f32
    %67 = vector.broadcast %cst_25 : f32 to vector<24x24xf32>
    %68 = arith.mulf %66, %67 : vector<24x24xf32>
    %cst_26 = arith.constant dense<0xFF800000> : vector<24xf32>
    %69 = vector.multi_reduction <maximumf>, %68, %cst_26 [1] : vector<24x24xf32> to vector<24xf32>
    %70 = vector.shape_cast %69 : vector<24xf32> to vector<24x1xf32>
    %71 = vector.broadcast %70 : vector<24x1xf32> to vector<24x24xf32>
    %72 = arith.subf %68, %71 : vector<24x24xf32>
    %73 = math.exp %72 : vector<24x24xf32>
    %cst_27 = arith.constant dense<0.000000e+00> : vector<24xf32>
    %74 = vector.multi_reduction <add>, %73, %cst_27 [1] : vector<24x24xf32> to vector<24xf32>
    %75 = vector.shape_cast %74 : vector<24xf32> to vector<24x1xf32>
    %76 = vector.broadcast %75 : vector<24x1xf32> to vector<24x24xf32>
    %77 = arith.divf %73, %76 : vector<24x24xf32>
    %78 = arith.addf %61, %77 : vector<24x24xf32>
    %cst_28 = arith.constant dense<0.000000e+00> : vector<24x8xf32>
    %79 = tpu.matmul %77, %65, %cst_28 {dimension_numbers = #tpu.dot_dimension_numbers<[1], [0], [0], [1], [0, 0, 1, 1], [], []>} : vector<24x24xf32>, vector<24x8xf32>, vector<24x8xf32> -> vector<24x8xf32>
    %cst_29 = arith.constant 2.500000e-01 : f32
    %80 = vector.broadcast %cst_29 : f32 to vector<24x24xf32>
    %81 = arith.mulf %78, %80 : vector<24x24xf32>
    %c0_30 = arith.constant 0 : index
    %c0_31 = arith.constant 0 : index
    %c0_32 = arith.constant 0 : index
    %c0_33 = arith.constant 0 : index
    %82 = vector.load %arg23[%c0_30, %c0_31, %c0_32, %c0_33] : memref<1x1x24x24xf32, #tpu.memory_space<vmem>>, vector<1x1x24x24xf32>
    %83 = vector.shape_cast %82 : vector<1x1x24x24xf32> to vector<24x24xf32>
    %84 = vector.shape_cast %81 : vector<24x24xf32> to vector<1x1x24x24xf32>
    tpu.vector_store %arg23[%c0_30, %c0_31, %c0_32, %c0_33], %84 {strides = array<i32>} : memref<1x1x24x24xf32, #tpu.memory_space<vmem>>, vector<1x1x24x24xf32>,
    %85 = tpu.concatenate %28, %45, %62, %79 in 1 : vector<24x8xf32>, vector<24x8xf32>, vector<24x8xf32>, vector<24x8xf32> -> vector<24x32xf32>
    %c0_34 = arith.constant 0 : index
    %c0_35 = arith.constant 0 : index
    %c0_36 = arith.constant 0 : index
    %86 = vector.load %arg10[%c0_34, %c0_35, %c0_36] : memref<1x32x32xf32, #tpu.memory_space<vmem>>, vector<1x32x32xf32>
    %87 = vector.shape_cast %86 : vector<1x32x32xf32> to vector<32x32xf32>
    %cst_37 = arith.constant dense<0.000000e+00> : vector<24x32xf32>
    %88 = tpu.matmul %85, %87, %cst_37 {dimension_numbers = #tpu.dot_dimension_numbers<[1], [0], [0], [1], [0, 0, 1, 1], [], []>} : vector<24x32xf32>, vector<32x32xf32>, vector<24x32xf32> -> vector<24x32xf32>
    %c0_38 = arith.constant 0 : index
    %c0_39 = arith.constant 0 : index
    %c0_40 = arith.constant 0 : index
    %89 = vector.load %arg11[%c0_38, %c0_39, %c0_40] : memref<1x1x32xf32, #tpu.memory_space<vmem>>, vector<1x1x32xf32>
    %90 = vector.shape_cast %89 : vector<1x1x32xf32> to vector<1x32xf32>
    %91 = vector.broadcast %90 : vector<1x32xf32> to vector<24x32xf32>
    %92 = arith.addf %88, %91 : vector<24x32xf32>
    %93 = arith.addf %3, %92 : vector<24x32xf32>
    %c0_41 = arith.constant 0 : index
    %c0_42 = arith.constant 0 : index
    %c0_43 = arith.constant 0 : index
    %94 = vector.load %arg12[%c0_41, %c0_42, %c0_43] : memref<1x1x32xf32, #tpu.memory_space<vmem>>, vector<1x1x32xf32>
    %95 = vector.shape_cast %94 : vector<1x1x32xf32> to vector<1x32xf32>
    %c0_44 = arith.constant 0 : index
    %c0_45 = arith.constant 0 : index
    %c0_46 = arith.constant 0 : index
    %96 = vector.load %arg13[%c0_44, %c0_45, %c0_46] : memref<1x1x32xf32, #tpu.memory_space<vmem>>, vector<1x1x32xf32>
    %97 = vector.shape_cast %96 : vector<1x1x32xf32> to vector<1x32xf32>
    %cst_47 = arith.constant dense<0.000000e+00> : vector<24xf32>
    %98 = vector.multi_reduction <add>, %93, %cst_47 [1] : vector<24x32xf32> to vector<24xf32>
    %99 = vector.shape_cast %98 : vector<24xf32> to vector<24x1xf32>
    %cst_48 = arith.constant 3.200000e+01 : f32
    %100 = vector.broadcast %cst_48 : f32 to vector<24x1xf32>
    %101 = arith.divf %99, %100 : vector<24x1xf32>
    %102 = vector.broadcast %101 : vector<24x1xf32> to vector<24x32xf32>
    %103 = arith.subf %93, %102 : vector<24x32xf32>
    %104 = arith.mulf %103, %103 : vector<24x32xf32>
    %cst_49 = arith.constant dense<0.000000e+00> : vector<24xf32>
    %105 = vector.multi_reduction <add>, %104, %cst_49 [1] : vector<24x32xf32> to vector<24xf32>
    %106 = vector.shape_cast %105 : vector<24xf32> to vector<24x1xf32>
    %cst_50 = arith.constant 3.200000e+01 : f32
    %107 = vector.broadcast %cst_50 : f32 to vector<24x1xf32>
    %108 = arith.divf %106, %107 : vector<24x1xf32>
    %cst_51 = arith.constant 9.99999974E-6 : f32
    %109 = vector.broadcast %cst_51 : f32 to vector<24x1xf32>
    %110 = arith.addf %108, %109 : vector<24x1xf32>
    %111 = math.rsqrt %110 : vector<24x1xf32>
    %112 = vector.broadcast %111 : vector<24x1xf32> to vector<24x32xf32>
    %113 = arith.mulf %103, %112 : vector<24x32xf32>
    %114 = vector.broadcast %95 : vector<1x32xf32> to vector<24x32xf32>
    %115 = arith.mulf %113, %114 : vector<24x32xf32>
    %116 = vector.broadcast %97 : vector<1x32xf32> to vector<24x32xf32>
    %117 = arith.addf %115, %116 : vector<24x32xf32>
    %c0_52 = arith.constant 0 : index
    %c0_53 = arith.constant 0 : index
    %c0_54 = arith.constant 0 : index
    %118 = vector.load %arg14[%c0_52, %c0_53, %c0_54] : memref<1x32x32xf32, #tpu.memory_space<vmem>>, vector<1x32x32xf32>
    %119 = vector.shape_cast %118 : vector<1x32x32xf32> to vector<32x32xf32>
    %cst_55 = arith.constant dense<0.000000e+00> : vector<24x32xf32>
    %120 = tpu.matmul %117, %119, %cst_55 {dimension_numbers = #tpu.dot_dimension_numbers<[1], [0], [0], [1], [0, 0, 1, 1], [], []>} : vector<24x32xf32>, vector<32x32xf32>, vector<24x32xf32> -> vector<24x32xf32>
    %c0_56 = arith.constant 0 : index
    %c0_57 = arith.constant 0 : index
    %c0_58 = arith.constant 0 : index
    %121 = vector.load %arg15[%c0_56, %c0_57, %c0_58] : memref<1x1x32xf32, #tpu.memory_space<vmem>>, vector<1x1x32xf32>
    %122 = vector.shape_cast %121 : vector<1x1x32xf32> to vector<1x32xf32>
    %123 = vector.broadcast %122 : vector<1x32xf32> to vector<24x32xf32>
    %124 = arith.addf %120, %123 : vector<24x32xf32>
    %cst_59 = arith.constant 0.000000e+00 : f32
    %125 = vector.broadcast %cst_59 : f32 to vector<24x32xf32>
    %126 = arith.maximumf %124, %125 : vector<24x32xf32>
    %c0_60 = arith.constant 0 : index
    %c0_61 = arith.constant 0 : index
    %c0_62 = arith.constant 0 : index
    %127 = vector.load %arg16[%c0_60, %c0_61, %c0_62] : memref<1x32x32xf32, #tpu.memory_space<vmem>>, vector<1x32x32xf32>
    %128 = vector.shape_cast %127 : vector<1x32x32xf32> to vector<32x32xf32>
    %cst_63 = arith.constant dense<0.000000e+00> : vector<24x32xf32>
    %129 = tpu.matmul %126, %128, %cst_63 {dimension_numbers = #tpu.dot_dimension_numbers<[1], [0], [0], [1], [0, 0, 1, 1], [], []>} : vector<24x32xf32>, vector<32x32xf32>, vector<24x32xf32> -> vector<24x32xf32>
    %c0_64 = arith.constant 0 : index
    %c0_65 = arith.constant 0 : index
    %c0_66 = arith.constant 0 : index
    %130 = vector.load %arg17[%c0_64, %c0_65, %c0_66] : memref<1x1x32xf32, #tpu.memory_space<vmem>>, vector<1x1x32xf32>
    %131 = vector.shape_cast %130 : vector<1x1x32xf32> to vector<1x32xf32>
    %132 = vector.broadcast %131 : vector<1x32xf32> to vector<24x32xf32>
    %133 = arith.addf %129, %132 : vector<24x32xf32>
    %134 = arith.addf %117, %133 : vector<24x32xf32>
    %c0_67 = arith.constant 0 : index
    %c0_68 = arith.constant 0 : index
    %c0_69 = arith.constant 0 : index
    %135 = vector.load %arg18[%c0_67, %c0_68, %c0_69] : memref<1x1x32xf32, #tpu.memory_space<vmem>>, vector<1x1x32xf32>
    %136 = vector.shape_cast %135 : vector<1x1x32xf32> to vector<1x32xf32>
    %c0_70 = arith.constant 0 : index
    %c0_71 = arith.constant 0 : index
    %c0_72 = arith.constant 0 : index
    %137 = vector.load %arg19[%c0_70, %c0_71, %c0_72] : memref<1x1x32xf32, #tpu.memory_space<vmem>>, vector<1x1x32xf32>
    %138 = vector.shape_cast %137 : vector<1x1x32xf32> to vector<1x32xf32>
    %cst_73 = arith.constant dense<0.000000e+00> : vector<24xf32>
    %139 = vector.multi_reduction <add>, %134, %cst_73 [1] : vector<24x32xf32> to vector<24xf32>
    %140 = vector.shape_cast %139 : vector<24xf32> to vector<24x1xf32>
    %cst_74 = arith.constant 3.200000e+01 : f32
    %141 = vector.broadcast %cst_74 : f32 to vector<24x1xf32>
    %142 = arith.divf %140, %141 : vector<24x1xf32>
    %143 = vector.broadcast %142 : vector<24x1xf32> to vector<24x32xf32>
    %144 = arith.subf %134, %143 : vector<24x32xf32>
    %145 = arith.mulf %144, %144 : vector<24x32xf32>
    %cst_75 = arith.constant dense<0.000000e+00> : vector<24xf32>
    %146 = vector.multi_reduction <add>, %145, %cst_75 [1] : vector<24x32xf32> to vector<24xf32>
    %147 = vector.shape_cast %146 : vector<24xf32> to vector<24x1xf32>
    %cst_76 = arith.constant 3.200000e+01 : f32
    %148 = vector.broadcast %cst_76 : f32 to vector<24x1xf32>
    %149 = arith.divf %147, %148 : vector<24x1xf32>
    %cst_77 = arith.constant 9.99999974E-6 : f32
    %150 = vector.broadcast %cst_77 : f32 to vector<24x1xf32>
    %151 = arith.addf %149, %150 : vector<24x1xf32>
    %152 = math.rsqrt %151 : vector<24x1xf32>
    %153 = vector.broadcast %152 : vector<24x1xf32> to vector<24x32xf32>
    %154 = arith.mulf %144, %153 : vector<24x32xf32>
    %155 = vector.broadcast %136 : vector<1x32xf32> to vector<24x32xf32>
    %156 = arith.mulf %154, %155 : vector<24x32xf32>
    %157 = vector.broadcast %138 : vector<1x32xf32> to vector<24x32xf32>
    %158 = arith.addf %156, %157 : vector<24x32xf32>
    %c0_78 = arith.constant 0 : index
    %c0_79 = arith.constant 0 : index
    %159 = vector.load %arg24[%c0_78, %c0_79] : memref<24x32xf32, #tpu.memory_space<vmem>>, vector<24x32xf32>
    tpu.vector_store %arg24[%c0_78, %c0_79], %158 {strides = array<i32>} : memref<24x32xf32, #tpu.memory_space<vmem>>, vector<24x32xf32>,
    %c2_i32 = arith.constant 2 : i32
    %160 = arith.cmpi eq, %arg1, %c2_i32 : i32
    %161 = arith.extui %160 : i1 to i32
    %c0_i32_80 = arith.constant 0 : i32
    %162 = arith.cmpi ne, %161, %c0_i32_80 : i32
    scf.if %162 {
      %163 = vector.extract_strided_slice %158 {offsets = [16, 0], sizes = [8, 32], strides = [1, 1]} : vector<24x32xf32> to vector<8x32xf32>
      %c0_81 = arith.constant 0 : index
      %c0_82 = arith.constant 0 : index
      %164 = vector.load %arg20[%c0_81, %c0_82] : memref<8x32xf32, #tpu.memory_space<vmem>>, vector<8x32xf32>
      %165 = arith.mulf %163, %164 : vector<8x32xf32>
      %cst_83 = arith.constant dense<0.000000e+00> : vector<8xf32>
      %166 = vector.multi_reduction <add>, %165, %cst_83 [1] : vector<8x32xf32> to vector<8xf32>
      %167 = vector.shape_cast %166 : vector<8xf32> to vector<8x1xf32>
      %c0_84 = arith.constant 0 : index
      %c0_85 = arith.constant 0 : index
      %168 = vector.load %arg21[%c0_84, %c0_85] : memref<8x1xf32, #tpu.memory_space<vmem>>, vector<8x1xf32>
      %169 = arith.addf %167, %168 : vector<8x1xf32>
      %c0_86 = arith.constant 0 : index
      %c0_87 = arith.constant 0 : index
      %c0_88 = arith.constant 0 : index
      %170 = vector.load %arg22[%c0_86, %c0_87, %c0_88] : memref<1x8x1xf32, #tpu.memory_space<vmem>>, vector<1x8x1xf32>
      %171 = vector.shape_cast %170 : vector<1x8x1xf32> to vector<8x1xf32>
      %172 = vector.shape_cast %169 : vector<8x1xf32> to vector<1x8x1xf32>
      tpu.vector_store %arg22[%c0_86, %c0_87, %c0_88], %172 {strides = array<i32>} : memref<1x8x1xf32, #tpu.memory_space<vmem>>, vector<1x8x1xf32>,
    } else {
    }
    return
  }
  func.func @transform_0(%arg0: i32, %arg1: i32) -> (i32, i32, i32) {
    %c0_i32 = arith.constant 0 : i32
    %c0_i32_0 = arith.constant 0 : i32
    %c0_i32_1 = arith.constant 0 : i32
    return %arg0, %c0_i32, %c0_i32_0 : i32, i32, i32
  }
  func.func @transform_1(%arg0: i32, %arg1: i32) -> (i32, i32) {
    %c0_i32 = arith.constant 0 : i32
    %c0_i32_0 = arith.constant 0 : i32
    %c0_i32_1 = arith.constant 0 : i32
    return %c0_i32, %c0_i32_0 : i32, i32
  }
  func.func @transform_2(%arg0: i32, %arg1: i32) -> (i32, i32) {
    %c0_i32 = arith.constant 0 : i32
    %c0_i32_0 = arith.constant 0 : i32
    %c0_i32_1 = arith.constant 0 : i32
    return %c0_i32, %c0_i32_0 : i32, i32
  }
  func.func @transform_3(%arg0: i32, %arg1: i32) -> (i32, i32) {
    %c0_i32 = arith.constant 0 : i32
    %c0_i32_0 = arith.constant 0 : i32
    %c0_i32_1 = arith.constant 0 : i32
    return %c0_i32, %c0_i32_0 : i32, i32
  }
  func.func @transform_4(%arg0: i32, %arg1: i32) -> (i32, i32) {
    %c0_i32 = arith.constant 0 : i32
    %c0_i32_0 = arith.constant 0 : i32
    %c0_i32_1 = arith.constant 0 : i32
    return %c0_i32, %c0_i32_0 : i32, i32
  }
  func.func @transform_5(%arg0: i32, %arg1: i32) -> (i32, i32) {
    %c0_i32 = arith.constant 0 : i32
    %c0_i32_0 = arith.constant 0 : i32
    %c0_i32_1 = arith.constant 0 : i32
    return %c0_i32, %c0_i32_0 : i32, i32
  }
  func.func @transform_6(%arg0: i32, %arg1: i32) -> (i32, i32, i32) {
    %c0_i32 = arith.constant 0 : i32
    %c0_i32_0 = arith.constant 0 : i32
    %c0_i32_1 = arith.constant 0 : i32
    return %arg1, %c0_i32, %c0_i32_0 : i32, i32, i32
  }
  func.func @transform_7(%arg0: i32, %arg1: i32) -> (i32, i32, i32) {
    %c0_i32 = arith.constant 0 : i32
    %c0_i32_0 = arith.constant 0 : i32
    %c0_i32_1 = arith.constant 0 : i32
    return %arg1, %c0_i32, %c0_i32_0 : i32, i32, i32
  }
  func.func @transform_8(%arg0: i32, %arg1: i32) -> (i32, i32, i32) {
    %c0_i32 = arith.constant 0 : i32
    %c0_i32_0 = arith.constant 0 : i32
    %c0_i32_1 = arith.constant 0 : i32
    return %arg1, %c0_i32, %c0_i32_0 : i32, i32, i32
  }
  func.func @transform_9(%arg0: i32, %arg1: i32) -> (i32, i32, i32) {
    %c0_i32 = arith.constant 0 : i32
    %c0_i32_0 = arith.constant 0 : i32
    %c0_i32_1 = arith.constant 0 : i32
    return %arg1, %c0_i32, %c0_i32_0 : i32, i32, i32
  }
  func.func @transform_10(%arg0: i32, %arg1: i32) -> (i32, i32, i32) {
    %c0_i32 = arith.constant 0 : i32
    %c0_i32_0 = arith.constant 0 : i32
    %c0_i32_1 = arith.constant 0 : i32
    return %arg1, %c0_i32, %c0_i32_0 : i32, i32, i32
  }
  func.func @transform_11(%arg0: i32, %arg1: i32) -> (i32, i32, i32) {
    %c0_i32 = arith.constant 0 : i32
    %c0_i32_0 = arith.constant 0 : i32
    %c0_i32_1 = arith.constant 0 : i32
    return %arg1, %c0_i32, %c0_i32_0 : i32, i32, i32
  }
  func.func @transform_12(%arg0: i32, %arg1: i32) -> (i32, i32, i32) {
    %c0_i32 = arith.constant 0 : i32
    %c0_i32_0 = arith.constant 0 : i32
    %c0_i32_1 = arith.constant 0 : i32
    return %arg1, %c0_i32, %c0_i32_0 : i32, i32, i32
  }
  func.func @transform_13(%arg0: i32, %arg1: i32) -> (i32, i32, i32) {
    %c0_i32 = arith.constant 0 : i32
    %c0_i32_0 = arith.constant 0 : i32
    %c0_i32_1 = arith.constant 0 : i32
    return %arg1, %c0_i32, %c0_i32_0 : i32, i32, i32
  }
  func.func @transform_14(%arg0: i32, %arg1: i32) -> (i32, i32, i32) {
    %c0_i32 = arith.constant 0 : i32
    %c0_i32_0 = arith.constant 0 : i32
    %c0_i32_1 = arith.constant 0 : i32
    return %arg1, %c0_i32, %c0_i32_0 : i32, i32, i32
  }
  func.func @transform_15(%arg0: i32, %arg1: i32) -> (i32, i32, i32) {
    %c0_i32 = arith.constant 0 : i32
    %c0_i32_0 = arith.constant 0 : i32
    %c0_i32_1 = arith.constant 0 : i32
    return %arg1, %c0_i32, %c0_i32_0 : i32, i32, i32
  }
  func.func @transform_16(%arg0: i32, %arg1: i32) -> (i32, i32, i32) {
    %c0_i32 = arith.constant 0 : i32
    %c0_i32_0 = arith.constant 0 : i32
    %c0_i32_1 = arith.constant 0 : i32
    return %arg1, %c0_i32, %c0_i32_0 : i32, i32, i32
  }
  func.func @transform_17(%arg0: i32, %arg1: i32) -> (i32, i32, i32) {
    %c0_i32 = arith.constant 0 : i32
    %c0_i32_0 = arith.constant 0 : i32
    %c0_i32_1 = arith.constant 0 : i32
    return %arg1, %c0_i32, %c0_i32_0 : i32, i32, i32
  }
  func.func @transform_18(%arg0: i32, %arg1: i32) -> (i32, i32) {
    %c0_i32 = arith.constant 0 : i32
    %c0_i32_0 = arith.constant 0 : i32
    %c0_i32_1 = arith.constant 0 : i32
    return %c0_i32, %c0_i32_0 : i32, i32
  }
  func.func @transform_19(%arg0: i32, %arg1: i32) -> (i32, i32) {
    %c0_i32 = arith.constant 0 : i32
    %c0_i32_0 = arith.constant 0 : i32
    %c0_i32_1 = arith.constant 0 : i32
    return %c0_i32, %c0_i32_0 : i32, i32
  }
  func.func @transform_20(%arg0: i32, %arg1: i32) -> (i32, i32, i32) {
    %c0_i32 = arith.constant 0 : i32
    %c0_i32_0 = arith.constant 0 : i32
    %c0_i32_1 = arith.constant 0 : i32
    return %arg0, %c0_i32, %c0_i32_0 : i32, i32, i32
  }
  func.func @transform_21(%arg0: i32, %arg1: i32) -> (i32, i32, i32, i32) {
    %c0_i32 = arith.constant 0 : i32
    %c0_i32_0 = arith.constant 0 : i32
    %c0_i32_1 = arith.constant 0 : i32
    return %arg1, %arg0, %c0_i32, %c0_i32_0 : i32, i32, i32, i32
  }
}

</mosaic_0001>

<bundles_post_ra>
// kernel: together3_forward.1
= control target key start
LH: loop header
LB: loop body
LE: loop exit
PB: predicated region body
PF: predicated region fallthrough
CT: control target
= control target key end

     0   :  { %s3622_s25 = smov 0   ;;  %s3624_s26 = smov 0   ;;  %s4195_s0 = inlined_call_operand.vmem [shape: f32[2,16,48], index: 0, kind: input, shape index: {}]   ;;  %s4196_s1 = inlined_call_operand.vmem [shape: f32[8,32], index: 1, kind: input, shape index: {}]   ;;  %s4197_s2 = inlined_call_operand.vmem [shape: f32[48,32], index: 2, kind: input, shape index: {}]   ;;  %s4198_s3 = inlined_call_operand.vmem [shape: f32[1,32], index: 3, kind: input, shape index: {}]   ;;  %s4199_s4 = inlined_call_operand.vmem [shape: f32[1,32], index: 4, kind: input, shape index: {}]   ;;  %s4200_s5 = inlined_call_operand.vmem [shape: f32[1,32], index: 5, kind: input, shape index: {}]   ;;  %s4201_s6 = inlined_call_operand.vmem [shape: f32[3,32,96], index: 6, kind: input, shape index: {}]   ;;  %s4202_s7 = inlined_call_operand.vmem [shape: f32[3,1,96], index: 7, kind: input, shape index: {}]   ;;  %s4203_s8 = inlined_call_operand.vmem [shape: f32[3,32,32], index: 8, kind: input, shape index: {}]   ;;  %s4204_s9 = inlined_call_operand.vmem [shape: f32[3,1,32], index: 9, kind: input, shape index: {}]   ;;  %s4205_s10 = inlined_call_operand.vmem [shape: f32[3,1,32], index: 10, kind: input, shape index: {}]   ;;  %s4206_s11 = inlined_call_operand.vmem [shape: f32[3,1,32], index: 11, kind: input, shape index: {}]   ;;  %s4207_s12 = inlined_call_operand.vmem [shape: f32[3,32,32], index: 12, kind: input, shape index: {}]   ;;  %s4208_s13 = inlined_call_operand.vmem [shape: f32[3,1,32], index: 13, kind: input, shape index: {}]   ;;  %s4209_s14 = inlined_call_operand.vmem [shape: f32[3,32,32], index: 14, kind: input, shape index: {}]   ;;  %s4210_s15 = inlined_call_operand.vmem [shape: f32[3,1,32], index: 15, kind: input, shape index: {}]   ;;  %s4211_s16 = inlined_call_operand.vmem [shape: f32[3,1,32], index: 16, kind: input, shape index: {}]   ;;  %s4212_s17 = inlined_call_operand.vmem [shape: f32[3,1,32], index: 17, kind: input, shape index: {}]   ;;  %s4213_s18 = inlined_call_operand.vmem [shape: f32[8,32], index: 18, kind: input, shape index: {}]   ;;  %s4214_s19 = inlined_call_operand.vmem [shape: f32[8,1], index: 19, kind: input, shape index: {}]   ;;  %s4215_s20 = inlined_call_operand.vmem [shape: f32[2,8,1], index: 20, kind: output, shape index: {0}]   ;;  %s4216_s21 = inlined_call_operand.vmem [shape: f32[3,2,24,24], index: 21, kind: output, shape index: {1}]  }
   0x1   :  { %4224 = sst [smem:[#allocation11_spill]] %s4195_s0  ;;  %s3626_s27 = smov 0  }
   0x2   :  { %4225 = sst [smem:[#allocation12_spill]] %s4196_s1 }
   0x3   :  { %4226 = sst [smem:[#allocation13_spill]] %s4197_s2  ;;  %s3620_s2 = smov 0  }
   0x4   :  { %4227 = sst [smem:[#allocation14_spill]] %s4198_s3  ;;  %s3628_s3 = smov 0  }
   0x5   :  { %4228 = sst [smem:[#allocation15_spill]] %s4199_s4 }
   0x6   :  { %4229 = sst [smem:[#allocation16_spill]] %s4200_s5 }
   0x7   :  { %4230 = sst [smem:[#allocation17_spill]] %s4201_s6 }
   0x8   :  { %4231 = sst [smem:[#allocation18_spill]] %s4203_s8 }
   0x9   :  { %4232 = sst [smem:[#allocation19_spill]] %s4207_s12 }
   0xa   :  { %4233 = sst [smem:[#allocation20_spill]] %s4208_s13 }
   0xb   :  { %4234 = sst [smem:[#allocation21_spill]] %s4209_s14 }
   0xc   :  { %4235 = sst [smem:[#allocation22_spill]] %s4213_s18 }
   0xd   :  { %4236 = sst [smem:[#allocation23_spill]] %s4214_s19 }
   0xe   :  { %4237 = sst [smem:[#allocation24_spill]] %s4215_s20 }
   0xf   :  { %4238 = sst [smem:[#allocation25_spill]] %s4216_s21 }
  0x10 LB: > { %4239 = sst [smem:[#allocation3_spill]] %s3475_s2  ;;  %s41_s28 = sadd.s32 1, %s3483_s26  ;;  %s3491_s3 = sphi %s3628_s3, %s32_s3   ;;  %s3487_s27 = sphi %s3626_s27, %s4282_s27   ;;  %s3483_s26 = sphi %s3624_s26, %s4281_s26   ;;  %s3479_s25 = sphi %s3622_s25, %s4280_s25   ;;  %s3475_s2 = sphi %s3620_s2, %s4279_s2  }
  0x11   : > { %4240 = sst [smem:[#allocation4_spill]] %s3483_s26  ;;  %s44_s29 = sadd.s32 1, %s3487_s27 }
  0x12   : > { %4241 = sst [smem:[#allocation5_spill]] %s3487_s27  ;;  %p42_p0 = scmp.ge.s32.totalorder %s41_s28, 3 }
  0x13   : > { %4242 = sst [smem:[#allocation6_spill]] %s3491_s3  ;;  %p2854_p1 = scmp.ge.s32.totalorder %s3491_s3, 1 }
  0x14   : > { %p708_p2 = scmp.lt.s32.totalorder %s3491_s3, 7  ;;  %s4284_s28 = smov (%p42_p0, %s41_s28), 0 }
  0x15   : > { %4243 = sst [smem:[#allocation7_spill]] %s4284_s28  ;;  %s4286_s29 = smov (!%p42_p0, %s44_s29), %s3487_s27 }
  0x16   : > { %p709_p3 = pnand %p2854_p1, %p708_p2  ;;  %p46_p4 = scmp.ge.s32.totalorder %s4286_s29, 2 }
  0x18   : > { %s4288_s29 = smov (%p46_p4, %s4286_s29), 0  ;;  %712 = sbr.rel (%p709_p3) target bundleno = 3347 (0xd13), region = 100 }
  0x19   : > { %4244 = sst [smem:[#allocation8_spill]] %s4288_s29 }
  0x1f   : > { %p820_p5 = scmp.lt.s32.totalorder %s3479_s25, 1  ;;  %p825_p6 = scmp.lt.s32.totalorder %s3475_s2, 2 }
  0x20   : > { %s4245_s23 = sld [smem:[#allocation11_spill]]  ;;  %s4247_s6 = sld [smem:[#allocation17_spill]] }
  0x21   : > { %s4290_s25 = smov (!%p820_p5, %s3479_s25), 1  ;;  %s4249_s8 = sld [smem:[#allocation18_spill]] }
  0x22   : > { %s3654_s0 = scalar_select %p825_p6, %s3475_s2, 2 }
  0x23   : > { %s2932_s4 = sshll.u32 %s4290_s25, 4  ;;  %s2865_s30 = sshll.u32 %s4290_s25, 3 }
  0x24   : > { %s2933_s24 = sshll.u32 %s3654_s0, 5  ;;  %s4250_s12 = sld [smem:[#allocation19_spill]] }
  0x25   : > { %s4252_s14 = sld [smem:[#allocation21_spill]]  ;;  %s4253_s2 = sld [smem:[#allocation24_spill]] }
  0x26   : > { %s3659_s1 = scalar_lea.vmem %s4245_s23, %s2932_s4  ;;  %s3665_s27 = scalar_lea.vmem %s4247_s6, %s2933_s24 }
  0x27   : > { %4246 = sst [smem:[#allocation9_spill]] %s3659_s1  ;;  %s3674_s21 = scalar_lea.vmem %s4249_s8, %s2933_s24 }
  0x28   : > { %4248 = sst [smem:[#allocation10_spill]] %s3665_s27  ;;  %s3288_s8 = smul.u32 3, %s4290_s25 }
  0x29   : > { %s4254_s23 = sld [smem:[#allocation25_spill]]  ;;  %s4255_s28 = sld [smem:[#allocation3_spill]] }
  0x2a   : > { %s3691_s3 = scalar_lea.vmem %s4250_s12, %s2933_s24 }
  0x2b   : > { %s3700_s5 = scalar_lea.vmem %s4252_s14, %s2933_s24  ;;  %s3717_s19 = scalar_lea.vmem %s4253_s2, %s2865_s30 }
  0x2c   : > { %s3289_s24 = smul.u32 6, %s3654_s0 }
  0x2e   : > { %s879_s20 = sadd.s32 %s3289_s24, %s3288_s8 }
  0x2f   : > { %s2866_s14 = sshll.u32 %s879_s20, 3  ;;  %p2867_p7 = scmp.ne.s32.totalorder %s4255_s28, 0 }
  0x30   : > { %s3723_s1 = scalar_lea.vmem %s4254_s23, %s2866_s14  ;;  %s4256_s26 = sld [smem:[#allocation13_spill]] (!%p2867_p7)  ;;  %vm901_vm0 = vcmask (!%p2867_p7), 392192   ;;  %vm988_vm1 = vcmask (!%p2867_p7), 261120  }
  0x31   : > { %885 = sbr.rel (%p2867_p7) target bundleno = 606 (0x25e), region = 104  ;;  %s4258_s6 = sld [smem:[#allocation9_spill]] (!%p2867_p7) }
  0x32   : > { %s4259_s28 = sld [smem:[#allocation12_spill]] (!%p2867_p7)  ;;  %s4261_s30 = sld [smem:[#allocation15_spill]] (!%p2867_p7) }
  0x33   : > { %s4262_s13 = sld [smem:[#allocation16_spill]] (!%p2867_p7) }
  0x36   : > { %s4257_s4 = smov (!%p2867_p7), %s4256_s26  ;;  %v888_v0 = vld [vmem:[%s4256_s26] sm:$0xff] (!%p2867_p7)  ;;  %s4260_s26 = sld [smem:[#allocation14_spill]] (!%p2867_p7) }
  0x37   : > { %v889_v1 = vld [vmem:[%s4257_s4 + $0x8] sm:$0xff] (!%p2867_p7)  ;;  %v890_v2 = vld [vmem:[%s4257_s4 + $0x10] sm:$0xff] (!%p2867_p7)  ;;  %v891_v4 = vld [vmem:[%s4257_s4 + $0x18] sm:$0xff] (!%p2867_p7) }
  0x38   : > { %v3224_v3 = vpack.c.bf16 %v889_v1, %v888_v0  ;;  %v3228_v5 = vpack.c.bf16 %v891_v4, %v890_v2  ;;  %v892_v6 = vld [vmem:[%s4257_s4 + $0x20] sm:$0xff]  ;;  %v893_v7 = vld [vmem:[%s4257_s4 + $0x28] sm:$0xff] }
  0x39   : > { %v886_v8 = vld [vmem:[%s4258_s6] sm:$0xff]  ;;  %v3232_v9 = vpack.c.bf16 %v893_v7, %v892_v6  ;;  %v887_v10 = vld [vmem:[%s4258_s6 + $0x8] sm:$0xff] }
  0x3a   : > { %3225 = vmatprep.subr.bf16.mxu0 %v3224_v3  ;;  %3033 = vmatprep.mubr.msk.f32.mxu0 %vm901_vm0, %v886_v8  ;;  %v985_v11 = vld [vmem:[%s4259_s28] sm:$0xff] }
  0x3b   : > { %3227 = vmatpush3.bf16.msra.mxu0 %v3224_v3  ;;  %v995_v12 = vsel %vm988_vm1, %v985_v11, 0.0  ;;  %v2871_v47 = vld [vmem:[%s4261_s30] ss:$0 sm:$0xff] }
  0x3c   : > { %3229 = vmatprep.subr.bf16.mxu0 %v3228_v5  ;;  %996 = vadd.xlane.f32.xlu1 %v995_v12  ;;  %v2868_v13 = vld [vmem:[%s4260_s26] ss:$0 sm:$0xff] }
  0x3d   : > { %v2872_v49 = vld [vmem:[%s4262_s13] ss:$0 sm:$0xff] }
  0x3f   : > { %3231 = vmatpush3.bf16.msra.mxu0 %v3228_v5 }
  0x40   : > { %3233 = vmatprep.subr.bf16.mxu0 %v3232_v9 }
  0x43   : > { %3235 = vmatpush3.bf16.msra.mxu0 %v3232_v9 }
  0x46   : > { %3034 = vmatmul.mubr.msk.f32.vlgmr.msra.gmra.mrb[0].mxu0 %vm901_vm0, %v887_v10 }
  0xc9   : > { %v997_v22 = vpop.xlane.xlu1 %996 }
  0xca   : > { %v1001_v23 = vmul.f32 0.03125, %v997_v22 }
  0xcc   : > { %v1004_v26 = vsub.f32 %v985_v11, %v1001_v23 }
  0xce   : > { %v1007_v31 = vmul.f32 %v1004_v26, %v1004_v26 }
  0xd0   : > { %v1014_v34 = vsel %vm988_vm1, %v1007_v31, 0.0 }
 0x119   : > { %v3035_v14 = vpop.f32.mrb[0].mxu0 }
 0x11a   : > { %v974_v15 = vpop.f32.mrb[1].mxu0  ;;  %v980_v16 = vadd.f32 %v3035_v14, %v2868_v13 }
 0x11b   : > { %v975_v17 = vadd.f32 %v2868_v13, %v974_v15 }
 0x11c   : > { %v984_v19 = vmax.f32 %v980_v16, 0.0 }
 0x11d   : > { %v983_v18 = vmax.f32 %v975_v17, 0.0 }
 0x11e   : > { %v992_v21 = vsel %vm988_vm1, %v984_v19, 0.0 }
 0x11f   : > { %v989_v20 = vsel %vm988_vm1, %v983_v18, 0.0 }
 0x120   : > { %990 = vadd.xlane.f32.xlu0 %v989_v20 }
 0x124   : > { %993 = vadd.xlane.f32.xlu0 %v992_v21 }
 0x1ad   : > { %v991_v24 = vpop.xlane.xlu0 %990 }
 0x1ae   : > { %v999_v25 = vmul.f32 0.03125, %v991_v24 }
 0x1b0   : > { %v1002_v27 = vsub.f32 %v983_v18, %v999_v25 }
 0x1b1   : > { %v994_v28 = vpop.xlane.xlu0 %993 }
 0x1b2   : > { %v1000_v29 = vmul.f32 0.03125, %v994_v28  ;;  %v1005_v30 = vmul.f32 %v1002_v27, %v1002_v27 }
 0x1b4   : > { %v1003_v32 = vsub.f32 %v984_v19, %v1000_v29  ;;  %v1008_v33 = vsel %vm988_vm1, %v1005_v30, 0.0 }
 0x1b5   : > { %1009 = vadd.xlane.f32.xlu1 %v1008_v33 }
 0x1b6   : > { %v1006_v35 = vmul.f32 %v1003_v32, %v1003_v32 }
 0x1b8   : > { %v1011_v36 = vsel %vm988_vm1, %v1006_v35, 0.0 }
 0x1b9   : > { %1015 = vadd.xlane.f32.xlu1 %v1014_v34  ;;  %1012 = vadd.xlane.f32.xlu0 %v1011_v36 }
 0x242   : > { %v1010_v37 = vpop.xlane.xlu1 %1009 }
 0x243   : > { %v1017_v38 = vmul.f32 0.03125, %v1010_v37 }
 0x245   : > { %v1020_v39 = vadd.f32 1e-05, %v1017_v38 }
 0x246   : > { %v1016_v40 = vpop.xlane.xlu1 %1015  ;;  %v1013_v41 = vpop.xlane.xlu0 %1012 }
 0x247   : > { %3347 = vrsqrt.f32 %v1020_v39  ;;  %v1019_v42 = vmul.f32 0.03125, %v1016_v40  ;;  %v1018_v43 = vmul.f32 0.03125, %v1013_v41 }
 0x249   : > { %v1022_v44 = vadd.f32 1e-05, %v1019_v42  ;;  %v1021_v45 = vadd.f32 1e-05, %v1018_v43 }
 0x24b   : > { %3349 = vrsqrt.f32 %v1022_v44 }
 0x24c   : > { %3351 = vrsqrt.f32 %v1021_v45 }
 0x251   : > { %v3348_v46 = vpop.eup %3347 }
 0x252   : > { %v1026_v48 = vmul.f32 %v3348_v46, %v1002_v27 }
 0x254   : > { %v1035_v50 = vmul.f32 %v2871_v47, %v1026_v48 }
 0x255   : > { %v3350_v51 = vpop.eup %3349 }
 0x256   : > { %v3352_v52 = vpop.eup %3351  ;;  %v1044_v53 = vadd.f32 %v2872_v49, %v1035_v50  ;;  %v1028_v54 = vmul.f32 %v3350_v51, %v1004_v26 }
 0x257   : > { %v1027_v55 = vmul.f32 %v3352_v52, %v1003_v32 }
 0x258   : > { %1047 = vst.msk [vmem:[#allocation2] sm:$0xff] %vm988_vm1, %v1044_v53  ;;  %v1037_v56 = vmul.f32 %v2871_v47, %v1028_v54 }
 0x259   : > { %v1036_v57 = vmul.f32 %v2871_v47, %v1027_v55 }
 0x25a   : > { %v1046_v58 = vadd.f32 %v2872_v49, %v1037_v56 }
 0x25b   : > { %v1045_v59 = vadd.f32 %v2872_v49, %v1036_v57 }
 0x25c   : > { %1049 = vst.msk [vmem:[#allocation2 + $0x10] sm:$0xff] %vm988_vm1, %v1046_v58 }
 0x25d   : > { %1048 = vst.msk [vmem:[#allocation2 + $0x8] sm:$0xff] %vm988_vm1, %v1045_v59 }
 0x25e PF: > { %s4263_s14 = sld [smem:[#allocation10_spill]]  ;;  %v3493_v63 = vmov 0.0|0.0   ;;  %vm3494_vm2 = vmmov 0   ;;  %v3495_v2 = vmov 0.0   ;;  %vm1064_vm3 = vcmask 261120   ;;  %s4264_s24 = scalar_lea.vmem %s4202_s7, %s3654_s0 }
 0x25f   : > { %3236 = vmatprep.subr.bf16.mxu0 %v3493_v63  ;;  %3044 = vmatprep.mubr.msk.f32.mxu0 %vm3494_vm2, %v3495_v2  ;;  %v3780_v4 = vld [vmem:[#allocation2] sm:$0xff]  ;;  %s3496_s20 = smov 88   ;;  %s3497_s22 = smov 96   ;;  %vm1163_vm4 = vcmask 64512   ;;  %vm1259_vm6 = vcmask 195584   ;;  %vm2162_vm7 = vcmask 130048  }
 0x260   : > { %3242 = vmatprep.subr.bf16.mxu1 %v3493_v63  ;;  %3059 = vmatprep.mubr.msk.f32.mxu1 %vm3494_vm2, %v3495_v2  ;;  %v2873_v9 = vld [vmem:[%s4264_s24] ss:$0 sm:$0xff]  ;;  %s3498_s23 = smov 120   ;;  %s3499_s28 = smov 80   ;;  %vm3821_vm5 = vmpackc.low %vm1163_vm4, %vm1163_vm4 }
 0x261   : > { %s3500_s29 = smov 72   ;;  %s3501_s27 = smov 112  }
 0x262   : > { %s3502_s26 = smov 104   ;;  %s3503_s6 = smov 64  }
 0x263   : > { %v3793_v6 = vld [vmem:[#allocation2 + $0x10] sm:$0xff]  ;;  %s3504_s12 = smov 56   ;;  %s3505_s30 = smov 48  }
 0x264   : > { %v1053_v60 = vld [vmem:[%s4263_s14] sm:$0xff]  ;;  %v1054_v61 = vld [vmem:[%s4263_s14 + $0x8] sm:$0xff]  ;;  %v1055_v62 = vld [vmem:[%s4263_s14 + $0x10] sm:$0xff]  ;;  %s3506_s25 = smov 40   ;;  %s3508_s18 = smov 16  }
 0x265   : > { %v3237_v0 = vpack.c.bf16 %v1054_v61, %v1053_v60  ;;  %v1056_v1 = vld [vmem:[%s4263_s14 + $0x18] sm:$0xff]  ;;  %v3787_v5 = vld [vmem:[#allocation2 + $0x8] sm:$0xff]  ;;  %s3509_s13 = smov 24   ;;  %s4267_s2 = scalar_lea.vmem %s4204_s9, %s3654_s0 }
 0x266   : > { %v3240_v3 = vpack.c.bf16 %v1056_v1, %v1055_v62  ;;  %s4268_s24 = scalar_lea.vmem %s4205_s10, %s3654_s0  ;;  %s4275_s14 = sld [smem:[#allocation3_spill]] }
 0x267   : > { %3238 = vmatpush3.bf16.msra.mxu0 %v3237_v0 }
 0x268   : > { %3239 = vmatprep.subr.bf16.mxu0 %v3493_v63 }
 0x26b   : > { %3241 = vmatpush3.bf16.msra.mxu0 %v3240_v3 }
 0x26c   : > { %3246 = vmatprep.subr.bf16.mxu0 %v3493_v63  ;;  %p2929_p8 = scmp.ne.s32.totalorder %s4275_s14, 2 }
 0x26d   : > { %vm2611_vm8 = vcmask (!%p2929_p8), 7168  }
 0x26e   : > { %3045 = vmatmul.mubr.msk.f32.vlgmr.msra.gmra.mrb[0].mxu0 %vm1064_vm3, %v3780_v4 }
 0x26f   : > { %3047 = vmatprep.mubr.msk.f32.mxu0 %vm3494_vm2, %v3495_v2 }
 0x272   : > { %3048 = vmatmul.mubr.msk.f32.gmra.mrb[2].mxu0 %vm1064_vm3, %v3787_v5 }
 0x273   : > { %3050 = vmatprep.mubr.msk.f32.mxu0 %vm3494_vm2, %v3495_v2 }
 0x276   : > { %3051 = vmatmul.mubr.msk.f32.gmra.mrb[4].mxu0 %vm1064_vm3, %v3793_v6 }
 0x277   : > { %3074 = vmatprep.mubr.msk.f32.mxu0 %vm3494_vm2, %v3495_v2 }
 0x341   : > { %v1140_v7 = vpop.f32.mrb[0].mxu0 }
 0x342   : > { %v3046_v8 = vpop.f32.mrb[1].mxu0  ;;  %v1141_v11 = vadd.f32 %v2873_v9, %v1140_v7 }
 0x345   : > { %v1145_v10 = vpop.f32.mrb[2].mxu0 }
 0x346   : > { %v1146_v12 = vadd.f32 %v2873_v9, %v1145_v10  ;;  %v3049_v13 = vpop.f32.mrb[3].mxu0 }
 0x348   : > { %v3804_v14 = vpack.i.bf16 %v1146_v12, %v1141_v11 }
 0x349   : > { %v1150_v15 = vpop.f32.mrb[4].mxu0 }
 0x34a   : > { %3359 = vrot.lane.b32.xlu1 %v3804_v14, %s3496_s20  ;;  %3354 = vrot.lane.b32.xlu0 %v3804_v14, %s3497_s22  ;;  %v3808_v16 = vadd.f32 %v2873_v9, %v1150_v15  ;;  %v3052_v17 = vpop.f32.mrb[5].mxu0 }
 0x34e   : > { %1404 = vrot.lane.b32.xlu1 %v3808_v16, %s3496_s20  ;;  %1161 = vrot.lane.b32.xlu0 %v3808_v16, %s3497_s22  ;;  %s4277_s20 = sld [smem:[#allocation23_spill]] (!%p2929_p8) }
 0x352   : > { %1394 = vrot.lane.b32.xlu1 %v1141_v11, %s3498_s23  ;;  %3364 = vrot.lane.b32.xlu0 %v3804_v14, %s3499_s28 }
 0x356   : > { %1398 = vrot.lane.b32.xlu1 %v3808_v16, %s3498_s23  ;;  %1396 = vrot.lane.b32.xlu0 %v1146_v12, %s3498_s23  ;;  %s4269_s23 = scalar_lea.vmem %s4206_s11, %s3654_s0 }
 0x35a   : > { %3369 = vrot.lane.b32.xlu1 %v3804_v14, %s3500_s29  ;;  %1645 = vrot.lane.b32.xlu0 %v3808_v16, %s3499_s28 }
 0x35e   : > { %1637 = vrot.lane.b32.xlu1 %v1146_v12, %s3501_s27  ;;  %1635 = vrot.lane.b32.xlu0 %v1141_v11, %s3501_s27 }
 0x362   : > { %1886 = vrot.lane.b32.xlu1 %v3808_v16, %s3500_s29  ;;  %1639 = vrot.lane.b32.xlu0 %v3808_v16, %s3501_s27  ;;  %s4270_s27 = sld [smem:[#allocation20_spill]] }
 0x366   : > { %1878 = vrot.lane.b32.xlu1 %v1146_v12, %s3502_s26  ;;  %1876 = vrot.lane.b32.xlu0 %v1141_v11, %s3502_s26 }
 0x36a   : > { %1880 = vrot.lane.b32.xlu0 %v3808_v16, %s3502_s26  ;;  %s4271_s26 = scalar_lea.vmem %s4270_s27, %s3654_s0 }
 0x3bc   : > { %v3355_v18 = vpop.permute.xlu0 %3354  ;;  %v3360_v23 = vpop.permute.xlu1 %3359 }
 0x3bd   : > { %v3357_v19 = vunpack.i.h.bf16 %v3355_v18  ;;  %v3356_v20 = vunpack.i.l.bf16 %v3355_v18  ;;  %v3362_v24 = vunpack.i.h.bf16 %v3360_v23  ;;  %v3361_v25 = vunpack.i.l.bf16 %v3360_v23 }
 0x3bf   : > { %v3243_v22 = vpack.c.bf16 %v3357_v19, %v3356_v20  ;;  %v3250_v28 = vpack.c.bf16 %v3362_v24, %v3361_v25 }
 0x3c0   : > { %v1162_v26 = vpop.permute.xlu0 %1161  ;;  %v1405_v27 = vpop.permute.xlu1 %1404 }
 0x3c1   : > { %3245 = vmatpush3.bf16.xpose.msk.msra.mxu1 %vm3821_vm5, %v3243_v22 }
 0x3c2   : > { %3057 = vmatprep.subr.mxu1 %v3495_v2 }
 0x3c4   : > { %v1395_v29 = vpop.permute.xlu1 %1394  ;;  %v3365_v30 = vpop.permute.xlu0 %3364 }
 0x3c5   : > { %v3367_v31 = vunpack.i.h.bf16 %v3365_v30  ;;  %v3366_v32 = vunpack.i.l.bf16 %v3365_v30 }
 0x3c7   : > { %v3257_v34 = vpack.c.bf16 %v3367_v31, %v3366_v32 }
 0x3c8   : > { %v1399_v33 = vpop.permute.xlu1 %1398  ;;  %v1397_v35 = vpop.permute.xlu0 %1396 }
 0x3c9   : > { %3058 = vmatpush3.xpose.msk.msra.mxu1 %vm1163_vm4, %v1162_v26 }
 0x3ca   : > { %3249 = vmatprep.subr.bf16.mxu1 %v3493_v63 }
 0x3cc   : > { %3060 = vmatmul.mubr.msk.f32.vlgmr.msra.gmra.mrb[0].mxu1 %vm1163_vm4, %v1141_v11  ;;  %v3370_v36 = vpop.permute.xlu1 %3369  ;;  %v1646_v37 = vpop.permute.xlu0 %1645 }
 0x3cd   : > { %3252 = vmatpush3.bf16.xpose.msk.msra.mxu1 %vm3821_vm5, %v3250_v28  ;;  %3062 = vmatprep.mubr.msk.f32.mxu1 %vm3494_vm2, %v3495_v2  ;;  %v3372_v38 = vunpack.i.h.bf16 %v3370_v36  ;;  %v3371_v39 = vunpack.i.l.bf16 %v3370_v36 }
 0x3ce   : > { %3087 = vmatprep.subr.mxu1 %v3495_v2 }
 0x3cf   : > { %v3264_v40 = vpack.c.bf16 %v3372_v38, %v3371_v39 }
 0x3d0   : > { %3063 = vmatmul.mubr.msk.f32.gmra.mrb[2].mxu1 %vm1163_vm4, %v1146_v12  ;;  %v1636_v41 = vpop.permute.xlu0 %1635  ;;  %v1638_v42 = vpop.permute.xlu1 %1637 }
 0x3d1   : > { %3065 = vmatprep.mubr.msk.f32.mxu1 %vm3494_vm2, %v3495_v2 }
 0x3d4   : > { %3066 = vmatmul.mubr.msk.f32.gmra.mrb[4].mxu1 %vm1163_vm4, %v3808_v16  ;;  %v1640_v43 = vpop.permute.xlu0 %1639  ;;  %v1887_v44 = vpop.permute.xlu1 %1886 }
 0x3d5   : > { %3088 = vmatpush3.xpose.msk.msra.mxu1 %vm1163_vm4, %v1405_v27  ;;  %3089 = vmatprep.mubr.msk.f32.mxu1 %vm3494_vm2, %v3495_v2 }
 0x3d6   : > { %3256 = vmatprep.subr.bf16.mxu1 %v3493_v63 }
 0x3d8   : > { %3090 = vmatmul.mubr.msk.f32.vlgmr.msra.gmra.mrb[6].mxu1 %vm1163_vm4, %v1395_v29  ;;  %v1877_v45 = vpop.permute.xlu0 %1876  ;;  %v1879_v46 = vpop.permute.xlu1 %1878 }
 0x3d9   : > { %3259 = vmatpush3.bf16.xpose.msk.msra.mxu1 %vm3821_vm5, %v3257_v34  ;;  %3092 = vmatprep.mubr.msk.f32.mxu1 %vm3494_vm2, %v3495_v2 }
 0x3da   : > { %3117 = vmatprep.subr.mxu1 %v3495_v2 }
 0x3dc   : > { %3093 = vmatmul.mubr.msk.f32.gmra.mrb[8].mxu1 %vm1163_vm4, %v1397_v35  ;;  %v1881_v47 = vpop.permute.xlu0 %1880 }
 0x3dd   : > { %3095 = vmatprep.mubr.msk.f32.mxu1 %vm3494_vm2, %v3495_v2 }
 0x3e0   : > { %3096 = vmatmul.mubr.msk.f32.gmra.mrb[10].mxu1 %vm1163_vm4, %v1399_v33 }
 0x3e1   : > { %3118 = vmatpush3.xpose.msk.msra.mxu1 %vm1163_vm4, %v1646_v37  ;;  %3119 = vmatprep.mubr.msk.f32.mxu1 %vm3494_vm2, %v3495_v2 }
 0x3e2   : > { %3263 = vmatprep.subr.bf16.mxu1 %v3493_v63 }
 0x3e4   : > { %3120 = vmatmul.mubr.msk.f32.vlgmr.msra.gmra.mrb[12].mxu1 %vm1163_vm4, %v1636_v41 }
 0x3e5   : > { %3266 = vmatpush3.bf16.xpose.msk.msra.mxu1 %vm3821_vm5, %v3264_v40  ;;  %3122 = vmatprep.mubr.msk.f32.mxu1 %vm3494_vm2, %v3495_v2 }
 0x3e6   : > { %3147 = vmatprep.subr.mxu1 %v3495_v2 }
 0x3e8   : > { %3123 = vmatmul.mubr.msk.f32.gmra.mrb[14].mxu1 %vm1163_vm4, %v1638_v42 }
 0x3e9   : > { %3125 = vmatprep.mubr.msk.f32.mxu1 %vm3494_vm2, %v3495_v2 }
 0x3ec   : > { %3126 = vmatmul.mubr.msk.f32.gmra.mrb[16].mxu1 %vm1163_vm4, %v1640_v43 }
 0x3ed   : > { %3148 = vmatpush3.xpose.msk.msra.mxu1 %vm1163_vm4, %v1887_v44  ;;  %3149 = vmatprep.mubr.msk.f32.mxu1 %vm3494_vm2, %v3495_v2 }
 0x3ee   : > { %3270 = vmatprep.subr.bf16.mxu1 %v3493_v63 }
 0x3f0   : > { %3150 = vmatmul.mubr.msk.f32.vlgmr.msra.gmra.mrb[18].mxu1 %vm1163_vm4, %v1877_v45 }
 0x3f1   : > { %3152 = vmatprep.mubr.msk.f32.mxu1 %vm3494_vm2, %v3495_v2 }
 0x3f4   : > { %3153 = vmatmul.mubr.msk.f32.gmra.mrb[20].mxu1 %vm1163_vm4, %v1879_v46 }
 0x3f5   : > { %3155 = vmatprep.mubr.msk.f32.mxu1 %vm3494_vm2, %v3495_v2 }
 0x3f8   : > { %3156 = vmatmul.mubr.msk.f32.gmra.mrb[22].mxu1 %vm1163_vm4, %v1881_v47 }
 0x3f9   : > { %3181 = vmatprep.mubr.msk.f32.mxu1 %vm3494_vm2, %v3495_v2 }
 0x49f   : > { %v1242_v48 = vpop.f32.mrb[0].mxu1 }
 0x4a0   : > { %v3882_v49 = vmul.f32 0.35355338, %v1242_v48  ;;  %v3061_v50 = vpop.f32.mrb[1].mxu1 }
 0x4a2   : > { %v1260_v51 = vsel %vm1259_vm6, %v3882_v49, -inf }
 0x4a3   : > { %1261 = vmax.xlane.f32.xlu1 %v1260_v51  ;;  %v1247_v52 = vpop.f32.mrb[2].mxu1 }
 0x4a4   : > { %v3886_v53 = vmul.f32 0.35355338, %v1247_v52  ;;  %v3064_v54 = vpop.f32.mrb[3].mxu1 }
 0x4a6   : > { %v1263_v55 = vsel %vm1259_vm6, %v3886_v53, -inf }
 0x4a7   : > { %1264 = vmax.xlane.f32.xlu0 %v1263_v55  ;;  %v1252_v56 = vpop.f32.mrb[4].mxu1 }
 0x4a8   : > { %v3890_v57 = vmul.f32 0.35355338, %v1252_v56  ;;  %v3067_v58 = vpop.f32.mrb[5].mxu1 }
 0x4aa   : > { %v1266_v59 = vsel %vm1259_vm6, %v3890_v57, -inf }
 0x4ab   : > { %1267 = vmax.xlane.f32.xlu0 %v1266_v59  ;;  %v1484_v60 = vpop.f32.mrb[6].mxu1 }
 0x4ac   : > { %v3894_v61 = vmul.f32 0.35355338, %v1484_v60  ;;  %v3091_v62 = vpop.f32.mrb[7].mxu1 }
 0x4ae   : > { %v1501_v0 = vsel %vm1259_vm6, %v3894_v61, -inf }
 0x4af   : > { %1502 = vmax.xlane.f32.xlu1 %v1501_v0  ;;  %v1489_v1 = vpop.f32.mrb[8].mxu1 }
 0x4b0   : > { %v3898_v3 = vmul.f32 0.35355338, %v1489_v1  ;;  %v3094_v7 = vpop.f32.mrb[9].mxu1 }
 0x4b2   : > { %v1504_v8 = vsel %vm1259_vm6, %v3898_v3, -inf }
 0x4b3   : > { %1505 = vmax.xlane.f32.xlu0 %v1504_v8  ;;  %v1494_v9 = vpop.f32.mrb[10].mxu1 }
 0x4b4   : > { %v3902_v10 = vmul.f32 0.35355338, %v1494_v9  ;;  %v3097_v11 = vpop.f32.mrb[11].mxu1 }
 0x4b6   : > { %v1507_v12 = vsel %vm1259_vm6, %v3902_v10, -inf }
 0x4b7   : > { %1508 = vmax.xlane.f32.xlu1 %v1507_v12  ;;  %v1725_v13 = vpop.f32.mrb[12].mxu1 }
 0x4b8   : > { %v3906_v15 = vmul.f32 0.35355338, %v1725_v13  ;;  %v3121_v17 = vpop.f32.mrb[13].mxu1 }
 0x4ba   : > { %v1742_v18 = vsel %vm1259_vm6, %v3906_v15, -inf }
 0x4bb   : > { %1743 = vmax.xlane.f32.xlu0 %v1742_v18  ;;  %v1730_v19 = vpop.f32.mrb[14].mxu1 }
 0x4bc   : > { %v3910_v20 = vmul.f32 0.35355338, %v1730_v19  ;;  %v3124_v21 = vpop.f32.mrb[15].mxu1 }
 0x4be   : > { %v1745_v22 = vsel %vm1259_vm6, %v3910_v20, -inf }
 0x4bf   : > { %1746 = vmax.xlane.f32.xlu1 %v1745_v22  ;;  %v1735_v23 = vpop.f32.mrb[16].mxu1 }
 0x4c0   : > { %v3914_v24 = vmul.f32 0.35355338, %v1735_v23  ;;  %v3127_v25 = vpop.f32.mrb[17].mxu1 }
 0x4c2   : > { %v1748_v26 = vsel %vm1259_vm6, %v3914_v24, -inf }
 0x4c3   : > { %1749 = vmax.xlane.f32.xlu0 %v1748_v26  ;;  %v1966_v27 = vpop.f32.mrb[18].mxu1 }
 0x4c4   : > { %v3918_v28 = vmul.f32 0.35355338, %v1966_v27  ;;  %v3151_v29 = vpop.f32.mrb[19].mxu1 }
 0x4c6   : > { %v1983_v30 = vsel %vm1259_vm6, %v3918_v28, -inf }
 0x4c7   : > { %1984 = vmax.xlane.f32.xlu1 %v1983_v30  ;;  %v1971_v31 = vpop.f32.mrb[20].mxu1 }
 0x4c8   : > { %v3922_v32 = vmul.f32 0.35355338, %v1971_v31  ;;  %v3154_v33 = vpop.f32.mrb[21].mxu1 }
 0x4ca   : > { %v1986_v34 = vsel %vm1259_vm6, %v3922_v32, -inf }
 0x4cb   : > { %1987 = vmax.xlane.f32.xlu0 %v1986_v34  ;;  %v1976_v35 = vpop.f32.mrb[22].mxu1 }
 0x4cc   : > { %v3926_v36 = vmul.f32 0.35355338, %v1976_v35  ;;  %v3157_v37 = vpop.f32.mrb[23].mxu1 }
 0x4ce   : > { %v1989_v38 = vsel %vm1259_vm6, %v3926_v36, -inf }
 0x4cf   : > { %1990 = vmax.xlane.f32.xlu1 %v1989_v38 }
 0x4e0   : > { %3374 = vrot.lane.b32.xlu1 %v3804_v14, %s3503_s6 }
 0x4e1   : > { %1300 = vrot.lane.b32.xlu0 %v3808_v16, %s3503_s6 }
 0x4e5   : > { %3379 = vrot.lane.b32.xlu0 %v3804_v14, %s3504_s12 }
 0x530   : > { %v1262_v39 = vpop.xlane.xlu1 %1261 }
 0x531   : > { %v1269_v40 = vsub.f32 %v3882_v49, %v1262_v39 }
 0x533   : > { %v1272_v41 = vmul.f32 1.442695, %v1269_v40 }
 0x534   : > { %v1265_v42 = vpop.xlane.xlu0 %1264 }
 0x535   : > { %3393 = vpow2.f32 %v1272_v41  ;;  %v1270_v43 = vsub.f32 %v3886_v53, %v1265_v42 }
 0x537   : > { %v1274_v44 = vmul.f32 1.442695, %v1270_v43 }
 0x538   : > { %v1268_v45 = vpop.xlane.xlu0 %1267 }
 0x539   : > { %3395 = vpow2.f32 %v1274_v44  ;;  %v1271_v46 = vsub.f32 %v3890_v57, %v1268_v45 }
 0x53b   : > { %v1276_v47 = vmul.f32 1.442695, %v1271_v46 }
 0x53c   : > { %v1503_v48 = vpop.xlane.xlu1 %1502 }
 0x53d   : > { %3397 = vpow2.f32 %v1276_v47  ;;  %v1510_v50 = vsub.f32 %v3894_v61, %v1503_v48 }
 0x53f   : > { %v3938_v51 = vpop.eup %3393  ;;  %v1513_v52 = vmul.f32 1.442695, %v1510_v50 }
 0x540   : > { %v1506_v54 = vpop.xlane.xlu0 %1505  ;;  %v1278_v49 = vsel %vm1259_vm6, %v3938_v51, 0.0 }
 0x541   : > { %3399 = vpow2.f32 %v1513_v52  ;;  %v1511_v53 = vsub.f32 %v3898_v3, %v1506_v54  ;;  %1279 = vadd.xlane.f32.xlu0 %v1278_v49 }
 0x543   : > { %v3943_v55 = vpop.eup %3395  ;;  %v1515_v56 = vmul.f32 1.442695, %v1511_v53 }
 0x544   : > { %v1509_v57 = vpop.xlane.xlu1 %1508  ;;  %v1281_v58 = vsel %vm1259_vm6, %v3943_v55, 0.0 }
 0x545   : > { %3401 = vpow2.f32 %v1515_v56  ;;  %v1512_v59 = vsub.f32 %v3902_v10, %v1509_v57  ;;  %1282 = vadd.xlane.f32.xlu1 %v1281_v58 }
 0x547   : > { %v3948_v60 = vpop.eup %3397  ;;  %v1517_v61 = vmul.f32 1.442695, %v1512_v59 }
 0x548   : > { %v1744_v62 = vpop.xlane.xlu0 %1743  ;;  %v1284_v0 = vsel %vm1259_vm6, %v3948_v60, 0.0 }
 0x549   : > { %3403 = vpow2.f32 %v1517_v61  ;;  %v1751_v1 = vsub.f32 %v3906_v15, %v1744_v62  ;;  %1285 = vadd.xlane.f32.xlu0 %v1284_v0 }
 0x54b   : > { %v3953_v3 = vpop.eup %3399  ;;  %v1754_v7 = vmul.f32 1.442695, %v1751_v1 }
 0x54c   : > { %v1747_v8 = vpop.xlane.xlu1 %1746  ;;  %v1519_v9 = vsel %vm1259_vm6, %v3953_v3, 0.0 }
 0x54d   : > { %3405 = vpow2.f32 %v1754_v7  ;;  %v1752_v10 = vsub.f32 %v3910_v20, %v1747_v8  ;;  %1520 = vadd.xlane.f32.xlu1 %v1519_v9 }
 0x54f   : > { %v3958_v11 = vpop.eup %3401  ;;  %v1756_v12 = vmul.f32 1.442695, %v1752_v10 }
 0x550   : > { %v1750_v13 = vpop.xlane.xlu0 %1749  ;;  %v1522_v17 = vsel %vm1259_vm6, %v3958_v11, 0.0 }
 0x551   : > { %3407 = vpow2.f32 %v1756_v12  ;;  %v1753_v15 = vsub.f32 %v3914_v24, %v1750_v13  ;;  %1523 = vadd.xlane.f32.xlu0 %v1522_v17 }
 0x553   : > { %v3963_v18 = vpop.eup %3403  ;;  %v1758_v19 = vmul.f32 1.442695, %v1753_v15 }
 0x554   : > { %v1985_v21 = vpop.xlane.xlu1 %1984  ;;  %v1525_v22 = vsel %vm1259_vm6, %v3963_v18, 0.0 }
 0x555   : > { %3409 = vpow2.f32 %v1758_v19  ;;  %v1992_v20 = vsub.f32 %v3918_v28, %v1985_v21  ;;  %1526 = vadd.xlane.f32.xlu0 %v1525_v22 }
 0x557   : > { %v3968_v23 = vpop.eup %3405  ;;  %v1995_v25 = vmul.f32 1.442695, %v1992_v20 }
 0x558   : > { %v1760_v26 = vsel %vm1259_vm6, %v3968_v23, 0.0  ;;  %v1988_v37 = vpop.xlane.xlu0 %1987 }
 0x559   : > { %3411 = vpow2.f32 %v1995_v25  ;;  %1761 = vadd.xlane.f32.xlu0 %v1760_v26  ;;  %v1993_v41 = vsub.f32 %v3922_v32, %v1988_v37 }
 0x55b   : > { %v3972_v24 = vpop.eup %3407  ;;  %v1997_v42 = vmul.f32 1.442695, %v1993_v41 }
 0x55c   : > { %v1991_v27 = vpop.xlane.xlu1 %1990  ;;  %v1763_v29 = vsel %vm1259_vm6, %v3972_v24, 0.0  ;;  %v1301_v40 = vpop.permute.xlu0 %1300 }
 0x55d   : > { %1764 = vadd.xlane.f32.xlu1 %v1763_v29  ;;  %v1994_v43 = vsub.f32 %v3926_v36, %v1991_v27  ;;  %3413 = vpow2.f32 %v1997_v42 }
 0x55f   : > { %v3976_v30 = vpop.eup %3409  ;;  %v1999_v44 = vmul.f32 1.442695, %v1994_v43 }
 0x560   : > { %v3375_v31 = vpop.permute.xlu1 %3374  ;;  %v1766_v28 = vsel %vm1259_vm6, %v3976_v30, 0.0  ;;  %v3380_v32 = vpop.permute.xlu0 %3379 }
 0x561   : > { %v3377_v33 = vunpack.i.h.bf16 %v3375_v31  ;;  %1767 = vadd.xlane.f32.xlu0 %v1766_v28  ;;  %v3376_v34 = vunpack.i.l.bf16 %v3375_v31  ;;  %3415 = vpow2.f32 %v1999_v44  ;;  %v3382_v54 = vunpack.i.h.bf16 %v3380_v32 }
 0x562   : > { %v3381_v49 = vunpack.i.l.bf16 %v3380_v32 }
 0x563   : > { %v3980_v35 = vpop.eup %3411  ;;  %v3247_v38 = vpack.c.bf16 %v3377_v33, %v3376_v34 }
 0x564   : > { %v2001_v39 = vsel %vm1259_vm6, %v3980_v35, 0.0  ;;  %v3254_v57 = vpack.c.bf16 %v3382_v54, %v3381_v49 }
 0x565   : > { %2002 = vadd.xlane.f32.xlu1 %v2001_v39  ;;  %3248 = vmatpush3.bf16.msra.mxu0 %v3247_v38 }
 0x566   : > { %3072 = vmatprep.subr.mxu0 %v3495_v2 }
 0x567   : > { %v3991_v45 = vpop.eup %3413 }
 0x568   : > { %v2004_v46 = vsel %vm1259_vm6, %v3991_v45, 0.0 }
 0x569   : > { %3073 = vmatpush3.msra.mxu0 %v1301_v40 }
 0x56a   : > { %3253 = vmatprep.subr.bf16.mxu0 %v3493_v63 }
 0x56b   : > { %v3995_v47 = vpop.eup %3415 }
 0x56c   : > { %v2007_v48 = vsel %vm1259_vm6, %v3995_v47, 0.0 }
 0x576   : > { %1541 = vrot.lane.b32.xlu1 %v3808_v16, %s3504_s12  ;;  %s4272_s12 = scalar_lea.vmem %s4210_s15, %s3654_s0 }
 0x577   : > { %3384 = vrot.lane.b32.xlu0 %v3804_v14, %s3505_s30 }
 0x596   : > { %2005 = vadd.xlane.f32.xlu0 %v2004_v46 }
 0x59a   : > { %2008 = vadd.xlane.f32.xlu1 %v2007_v48 }
 0x5ac   : > { %1782 = vrot.lane.b32.xlu0 %v3808_v16, %s3505_s30 }
 0x5b0   : > { %3389 = vrot.lane.b32.xlu0 %v3804_v14, %s3506_s25 }
 0x5b4   : > { %2023 = vrot.lane.b32.xlu0 %v3808_v16, %s3506_s25 }
 0x5ce   : > { %v1280_v36 = vpop.xlane.xlu0 %1279 }
 0x5cf   : > { %3417 = vrcp.f32 %v1280_v36 }
 0x5d2   : > { %v1283_v50 = vpop.xlane.xlu1 %1282 }
 0x5d3   : > { %3419 = vrcp.f32 %v1283_v50 }
 0x5d6   : > { %v1286_v52 = vpop.xlane.xlu0 %1285 }
 0x5d7   : > { %3421 = vrcp.f32 %v1286_v52 }
 0x5d9   : > { %v3418_v53 = vpop.eup %3417 }
 0x5da   : > { %v1288_v56 = vmul.f32 %v3418_v53, %v3938_v51 }
 0x5dc   : > { %3075 = vmatmul.mubr.msk.f32.vlgmr.msra.gmra.mrb[6].mxu0 %vm1259_vm6, %v1288_v56 }
 0x5dd   : > { %v3420_v58 = vpop.eup %3419  ;;  %3255 = vmatpush3.bf16.msra.mxu0 %v3254_v57  ;;  %3077 = vmatprep.mubr.msk.f32.mxu0 %vm3494_vm2, %v3495_v2 }
 0x5de   : > { %v1524_v14 = vpop.xlane.xlu0 %1523  ;;  %v4007_v16 = vmul.f32 %v3420_v58, %v3943_v55  ;;  %3102 = vmatprep.subr.mxu0 %v3495_v2  ;;  %v1521_v55 = vpop.xlane.xlu1 %1520 }
 0x5df   : > { %3423 = vrcp.f32 %v1521_v55 }
 0x5e0   : > { %3078 = vmatmul.mubr.msk.f32.gmra.mrb[8].mxu0 %vm1259_vm6, %v4007_v16  ;;  %3425 = vrcp.f32 %v1524_v14 }
 0x5e1   : > { %v3422_v59 = vpop.eup %3421  ;;  %3080 = vmatprep.mubr.msk.f32.mxu0 %vm3494_vm2, %v3495_v2 }
 0x5e2   : > { %v4015_v51 = vmul.f32 %v3422_v59, %v3948_v60  ;;  %v1527_v61 = vpop.xlane.xlu0 %1526 }
 0x5e4   : > { %3081 = vmatmul.mubr.msk.f32.gmra.mrb[10].mxu0 %vm1259_vm6, %v4015_v51 }
 0x5e5   : > { %3104 = vmatprep.mubr.msk.f32.mxu0 %vm3494_vm2, %v3495_v2 }
 0x5e6   : > { %v1762_v62 = vpop.xlane.xlu0 %1761 }
 0x5e7   : > { %3427 = vrcp.f32 %v1762_v62  ;;  %v2169_v62 = vld [vmem:[%s3674_s21] sm:$0xff] }
 0x5e8   : > { %3429 = vrcp.f32 %v1527_v61 }
 0x5e9   : > { %v3424_v9 = vpop.eup %3423 }
 0x5ea   : > { %v1765_v0 = vpop.xlane.xlu1 %1764  ;;  %v3426_v12 = vpop.eup %3425  ;;  %v1529_v13 = vmul.f32 %v3424_v9, %v3953_v3 }
 0x5eb   : > { %v1531_v22 = vmul.f32 %v3426_v12, %v3958_v11 }
 0x5ec   : > { %v1534_v20 = vadd.f32 %v1529_v13, %v1288_v56 }
 0x5ed   : > { %v1535_v40 = vadd.f32 %v1531_v22, %v4007_v16 }
 0x5ee   : > { %v1768_v1 = vpop.xlane.xlu0 %1767 }
 0x5f1   : > { %v3428_v15 = vpop.eup %3427 }
 0x5f2   : > { %v3385_v7 = vpop.permute.xlu0 %3384  ;;  %v2003_v8 = vpop.xlane.xlu1 %2002  ;;  %v1770_v21 = vmul.f32 %v3428_v15, %v3968_v23 }
 0x5f3   : > { %v3387_v60 = vunpack.i.h.bf16 %v3385_v7  ;;  %v3386_v10 = vunpack.i.l.bf16 %v3385_v7  ;;  %3431 = vrcp.f32 %v2003_v8  ;;  %v3430_v3 = vpop.eup %3429  ;;  %v2171_v7 = vld [vmem:[%s3674_s21 + $0x10] sm:$0xff]  ;;  %v2172_v8 = vld [vmem:[%s3674_s21 + $0x18] sm:$0xff] }
 0x5f4   : > { %v1775_v26 = vadd.f32 %v1770_v21, %v1534_v20  ;;  %v1533_v29 = vmul.f32 %v3430_v3, %v3963_v18  ;;  %3433 = vrcp.f32 %v1765_v0  ;;  %v2170_v0 = vld [vmem:[%s3674_s21 + $0x8] sm:$0xff]  ;;  %v3274_v9 = vpack.c.bf16 %v2172_v8, %v2171_v7  ;;  %s4274_s21 = scalar_lea.vmem %s4212_s17, %s3654_s0 }
 0x5f5   : > { %v3261_v19 = vpack.c.bf16 %v3387_v60, %v3386_v10  ;;  %3435 = vrcp.f32 %v1768_v1  ;;  %v3271_v1 = vpack.c.bf16 %v2170_v0, %v2169_v62 }
 0x5f6   : > { %v1542_v17 = vpop.permute.xlu1 %1541 }
 0x5f7   : > { %3103 = vmatpush3.msra.mxu0 %v1542_v17  ;;  %3272 = vmatpush3.bf16.msra.mxu1 %v3271_v1 }
 0x5f8   : > { %3105 = vmatmul.mubr.msk.f32.vlgmr.msra.gmra.mrb[12].mxu0 %vm1259_vm6, %v1529_v13  ;;  %3260 = vmatprep.subr.bf16.mxu0 %v3493_v63 }
 0x5f9   : > { %3262 = vmatpush3.bf16.msra.mxu0 %v3261_v19  ;;  %3107 = vmatprep.mubr.msk.f32.mxu0 %vm3494_vm2, %v3495_v2 }
 0x5fa   : > { %3132 = vmatprep.subr.mxu0 %v3495_v2  ;;  %3273 = vmatprep.subr.bf16.mxu1 %v3493_v63 }
 0x5fb   : > { %3275 = vmatpush3.bf16.msra.mxu1 %v3274_v9  ;;  %v2332_v9 = vld [vmem:[%s3691_s3] sm:$0xff] }
 0x5fc   : > { %3108 = vmatmul.mubr.msk.f32.gmra.mrb[14].mxu0 %vm1259_vm6, %v1531_v22  ;;  %3282 = vmatprep.subr.bf16.mxu1 %v3493_v63 }
 0x5fd   : > { %v3432_v25 = vpop.eup %3431  ;;  %3110 = vmatprep.mubr.msk.f32.mxu0 %vm3494_vm2, %v3495_v2 }
 0x5fe   : > { %v2011_v27 = vmul.f32 %v3432_v25, %v3980_v35  ;;  %v3434_v34 = vpop.eup %3433 }
 0x5ff   : > { %v1772_v35 = vmul.f32 %v3434_v34, %v3972_v24  ;;  %v3436_v37 = vpop.eup %3435  ;;  %v1536_v24 = vadd.f32 %v1533_v29, %v4015_v51 }
 0x600   : > { %v2016_v31 = vadd.f32 %v2011_v27, %v1775_v26  ;;  %3111 = vmatmul.mubr.msk.f32.gmra.mrb[16].mxu0 %vm1259_vm6, %v1533_v29  ;;  %v1774_v44 = vmul.f32 %v3436_v37, %v3976_v30 }
 0x601   : > { %3134 = vmatprep.mubr.msk.f32.mxu0 %vm3494_vm2, %v3495_v2  ;;  %v1776_v43 = vadd.f32 %v1772_v35, %v1535_v40 }
 0x602   : > { %v2117_v11 = vmul.f32 0.25, %v2016_v31  ;;  %v1777_v50 = vadd.f32 %v1774_v44, %v1536_v24 }
 0x604   : > { %2120 = vst.msk [vmem:[%s3723_s1] sm:$0xff] %vm1259_vm6, %v2117_v11 }
 0x623   : > { %v2006_v23 = vpop.xlane.xlu0 %2005 }
 0x624   : > { %3437 = vrcp.f32 %v2006_v23 }
 0x627   : > { %v1783_v28 = vpop.permute.xlu0 %1782  ;;  %v2009_v33 = vpop.xlane.xlu1 %2008 }
 0x628   : > { %3439 = vrcp.f32 %v2009_v33  ;;  %3133 = vmatpush3.msra.mxu0 %v1783_v28 }
 0x629   : > { %3135 = vmatmul.mubr.msk.f32.vlgmr.msra.gmra.mrb[18].mxu0 %vm1259_vm6, %v1770_v21  ;;  %3267 = vmatprep.subr.bf16.mxu0 %v3493_v63 }
 0x62a   : > { %3137 = vmatprep.mubr.msk.f32.mxu0 %vm3494_vm2, %v3495_v2 }
 0x62b   : > { %v3390_v18 = vpop.permute.xlu0 %3389 }
 0x62c   : > { %v3392_v38 = vunpack.i.h.bf16 %v3390_v18  ;;  %v3391_v39 = vunpack.i.l.bf16 %v3390_v18 }
 0x62d   : > { %3138 = vmatmul.mubr.msk.f32.gmra.mrb[20].mxu0 %vm1259_vm6, %v1772_v35 }
 0x62e   : > { %v3438_v41 = vpop.eup %3437  ;;  %v3268_v42 = vpack.c.bf16 %v3392_v38, %v3391_v39  ;;  %3140 = vmatprep.mubr.msk.f32.mxu0 %vm3494_vm2, %v3495_v2 }
 0x62f   : > { %v2013_v46 = vmul.f32 %v3438_v41, %v3991_v45  ;;  %v2024_v36 = vpop.permute.xlu0 %2023 }
 0x630   : > { %3269 = vmatpush3.bf16.msra.mxu0 %v3268_v42 }
 0x631   : > { %3141 = vmatmul.mubr.msk.f32.gmra.mrb[22].mxu0 %vm1259_vm6, %v1774_v44  ;;  %3162 = vmatprep.subr.mxu0 %v3495_v2  ;;  %v2017_v48 = vadd.f32 %v2013_v46, %v1776_v43  ;;  %v2913_v44 = vld [vmem:[%s4267_s2] ss:$0 sm:$0xff] }
 0x632   : > { %v3440_v32 = vpop.eup %3439  ;;  %3164 = vmatprep.mubr.msk.f32.mxu0 %vm3494_vm2, %v3495_v2 }
 0x633   : > { %v2118_v52 = vmul.f32 0.25, %v2017_v48  ;;  %v2015_v30 = vmul.f32 %v3440_v32, %v3995_v47 }
 0x634   : > { %3163 = vmatpush3.msra.mxu0 %v2024_v36 }
 0x635   : > { %3165 = vmatmul.mubr.msk.f32.vlgmr.msra.gmra.mrb[24].mxu0 %vm1259_vm6, %v2011_v27  ;;  %2121 = vst.msk [vmem:[%s3723_s1 + $0x8] sm:$0xff] %vm1259_vm6, %v2118_v52  ;;  %v2018_v45 = vadd.f32 %v2015_v30, %v1777_v50  ;;  %3276 = vmatprep.subr.bf16.mxu0 %v3493_v63 }
 0x636   : > { %3167 = vmatprep.mubr.msk.f32.mxu0 %vm3494_vm2, %v3495_v2 }
 0x637   : > { %v2119_v54 = vmul.f32 0.25, %v2018_v45 }
 0x639   : > { %3168 = vmatmul.mubr.msk.f32.gmra.mrb[26].mxu0 %vm1259_vm6, %v2013_v46  ;;  %2122 = vst.msk [vmem:[%s3723_s1 + $0x10] sm:$0xff] %vm1259_vm6, %v2119_v54  ;;  %s3507_s1 = smov 8  }
 0x63a   : > { %3170 = vmatprep.mubr.msk.f32.mxu0 %vm3494_vm2, %v3495_v2 }
 0x63d   : > { %3171 = vmatmul.mubr.msk.f32.gmra.mrb[28].mxu0 %vm1259_vm6, %v2015_v30 }
 0x63e   : > { %3198 = vmatprep.mubr.msk.f32.mxu0 %vm3494_vm2, %v3495_v2 }
 0x6af   : > { %v1380_v47 = vpop.f32.mrb[6].mxu0 }
 0x6b0   : > { %v3076_v49 = vpop.f32.mrb[7].mxu0 }
 0x6b3   : > { %v1385_v53 = vpop.f32.mrb[8].mxu0 }
 0x6b4   : > { %v3079_v56 = vpop.f32.mrb[9].mxu0 }
 0x6b7   : > { %v1390_v57 = vpop.f32.mrb[10].mxu0 }
 0x6b8   : > { %v3082_v58 = vpop.f32.mrb[11].mxu0 }
 0x6cb   : > { %v1621_v14 = vpop.f32.mrb[12].mxu0 }
 0x6cc   : > { %2126 = vrot.lane.b32.xlu0 %v1621_v14, %s3507_s1  ;;  %v3106_v16 = vpop.f32.mrb[13].mxu0 }
 0x6cf   : > { %v1626_v59 = vpop.f32.mrb[14].mxu0 }
 0x6d0   : > { %v3109_v51 = vpop.f32.mrb[15].mxu0 }
 0x6d3   : > { %v1631_v61 = vpop.f32.mrb[16].mxu0 }
 0x6d4   : > { %v3112_v55 = vpop.f32.mrb[17].mxu0 }
 0x6fc   : > { %v1862_v60 = vpop.f32.mrb[18].mxu0 }
 0x6fd   : > { %2138 = vrot.lane.b32.xlu0 %v1862_v60, %s3508_s18  ;;  %v3136_v10 = vpop.f32.mrb[19].mxu0  ;;  %v2333_v60 = vld [vmem:[%s3691_s3 + $0x8] sm:$0xff] }
 0x6fe   : > { %v3277_v10 = vpack.c.bf16 %v2333_v60, %v2332_v9 }
 0x700   : > { %v1867_v12 = vpop.f32.mrb[20].mxu0  ;;  %3278 = vmatpush3.bf16.msra.mxu0 %v3277_v10 }
 0x701   : > { %2128 = vrot.lane.b32.xlu0 %v1626_v59, %s3507_s1  ;;  %v3139_v13 = vpop.f32.mrb[21].mxu0  ;;  %3279 = vmatprep.subr.bf16.mxu0 %v3493_v63 }
 0x702   : > { %v2335_v13 = vld [vmem:[%s3691_s3 + $0x18] sm:$0xff] }
 0x704   : > { %v1872_v17 = vpop.f32.mrb[22].mxu0 }
 0x705   : > { %2140 = vrot.lane.b32.xlu0 %v1867_v12, %s3508_s18  ;;  %v3142_v15 = vpop.f32.mrb[23].mxu0  ;;  %v2334_v12 = vld [vmem:[%s3691_s3 + $0x10] sm:$0xff]  ;;  %s4276_s3 = sld [smem:[#allocation22_spill]] (!%p2929_p8) }
 0x706   : > { %v2435_v15 = vld [vmem:[%s3700_s5] sm:$0xff] }
 0x708   : > { %v2103_v19 = vpop.f32.mrb[24].mxu0 }
 0x709   : > { %2130 = vrot.lane.b32.xlu0 %v1631_v61, %s3507_s1  ;;  %2150 = vrot.lane.b32.xlu1 %v2103_v19, %s3509_s13  ;;  %v3166_v21 = vpop.f32.mrb[25].mxu0  ;;  %v2436_v19 = vld [vmem:[%s3700_s5 + $0x8] sm:$0xff]  ;;  %s4273_s1 = scalar_lea.vmem %s4211_s16, %s3654_s0 }
 0x70a   : > { %v3283_v21 = vpack.c.bf16 %v2436_v19, %v2435_v15 }
 0x70c   : > { %v2108_v22 = vpop.f32.mrb[26].mxu0 }
 0x70d   : > { %2142 = vrot.lane.b32.xlu1 %v1872_v17, %s3508_s18  ;;  %2152 = vrot.lane.b32.xlu0 %v2108_v22, %s3509_s13  ;;  %v3169_v3 = vpop.f32.mrb[27].mxu0  ;;  %v3280_v17 = vpack.c.bf16 %v2335_v13, %v2334_v12 }
 0x70f   : > { %3281 = vmatpush3.bf16.msra.mxu0 %v3280_v17 }
 0x710   : > { %v2113_v20 = vpop.f32.mrb[28].mxu0 }
 0x711   : > { %2154 = vrot.lane.b32.xlu0 %v2113_v20, %s3509_s13  ;;  %v3172_v25 = vpop.f32.mrb[29].mxu0 }
 0x73e   : > { %v2127_v26 = vpop.permute.xlu0 %2126 }
 0x73f   : > { %v2159_v11 = vsel %vm1163_vm4, %v1380_v47, %v2127_v26 }
 0x76f   : > { %v2139_v27 = vpop.permute.xlu0 %2138 }
 0x770   : > { %v2163_v23 = vsel %vm2162_vm7, %v2159_v11, %v2139_v27 }
 0x773   : > { %v2129_v29 = vpop.permute.xlu0 %2128 }
 0x774   : > { %v2160_v18 = vsel %vm1163_vm4, %v1385_v53, %v2129_v29 }
 0x777   : > { %v2141_v31 = vpop.permute.xlu0 %2140 }
 0x778   : > { %v2164_v35 = vsel %vm2162_vm7, %v2160_v18, %v2141_v31 }
 0x77b   : > { %v2131_v28 = vpop.permute.xlu0 %2130  ;;  %v2151_v33 = vpop.permute.xlu1 %2150 }
 0x77c   : > { %v2166_v34 = vsel %vm1259_vm6, %v2163_v23, %v2151_v33  ;;  %v2161_v40 = vsel %vm1163_vm4, %v1390_v57, %v2131_v28  ;;  %v2917_v28 = vld [vmem:[%s4268_s24] ss:$0 sm:$0xff] }
 0x77d   : > { %3182 = vmatmul.mubr.msk.f32.vlgmr.msra.gmra.mrb[24].mxu1 %vm1064_vm3, %v2166_v34  ;;  %v2918_v33 = vld [vmem:[%s4269_s23] ss:$0 sm:$0xff] }
 0x77e   : > { %3184 = vmatprep.mubr.msk.f32.mxu1 %vm3494_vm2, %v3495_v2  ;;  %3284 = vmatpush3.bf16.msra.mxu1 %v3283_v21 }
 0x77f   : > { %v2153_v37 = vpop.permute.xlu0 %2152  ;;  %v2143_v38 = vpop.permute.xlu1 %2142  ;;  %3285 = vmatprep.subr.bf16.mxu1 %v3493_v63 }
 0x780   : > { %v2167_v39 = vsel %vm1259_vm6, %v2164_v35, %v2153_v37  ;;  %v2165_v41 = vsel %vm2162_vm7, %v2161_v40, %v2143_v38 }
 0x781   : > { %3185 = vmatmul.mubr.msk.f32.gmra.mrb[26].mxu1 %vm1064_vm3, %v2167_v39 }
 0x782   : > { %3187 = vmatprep.mubr.msk.f32.mxu1 %vm3494_vm2, %v3495_v2 }
 0x783   : > { %v2155_v42 = vpop.permute.xlu0 %2154 }
 0x784   : > { %v2168_v43 = vsel %vm1259_vm6, %v2165_v41, %v2155_v42 }
 0x785   : > { %3188 = vmatmul.mubr.msk.f32.gmra.mrb[28].mxu1 %vm1064_vm3, %v2168_v43 }
 0x786   : > { %3215 = vmatprep.mubr.msk.f32.mxu1 %vm3494_vm2, %v3495_v2 }
 0x850   : > { %v2255_v46 = vpop.f32.mrb[24].mxu1 }
 0x851   : > { %v2256_v24 = vadd.f32 %v2913_v44, %v2255_v46  ;;  %v3183_v48 = vpop.f32.mrb[25].mxu1  ;;  %v2438_v46 = vld [vmem:[%s3700_s5 + $0x18] sm:$0xff] }
 0x852   : > { %v2919_v48 = vld [vmem:[%s4271_s26] ss:$0 sm:$0xff] }
 0x853   : > { %v2269_v32 = vadd.f32 %v2256_v24, %v3780_v4 }
 0x854   : > { %v2260_v36 = vpop.f32.mrb[26].mxu1 }
 0x855   : > { %v2261_v50 = vadd.f32 %v2913_v44, %v2260_v36  ;;  %v3186_v52 = vpop.f32.mrb[27].mxu1  ;;  %v2274_v30 = vsel %vm1064_vm3, %v2269_v32, 0.0 }
 0x856   : > { %2275 = vadd.xlane.f32.xlu1 %v2274_v30 }
 0x857   : > { %v2270_v45 = vadd.f32 %v2261_v50, %v3787_v5 }
 0x858   : > { %v2265_v54 = vpop.f32.mrb[28].mxu1 }
 0x859   : > { %v2266_v47 = vadd.f32 %v2913_v44, %v2265_v54  ;;  %v3189_v49 = vpop.f32.mrb[29].mxu1  ;;  %v2277_v53 = vsel %vm1064_vm3, %v2270_v45, 0.0  ;;  %v2437_v44 = vld [vmem:[%s3700_s5 + $0x10] sm:$0xff] }
 0x85a   : > { %2278 = vadd.xlane.f32.xlu0 %v2277_v53  ;;  %v3286_v24 = vpack.c.bf16 %v2438_v46, %v2437_v44 }
 0x85b   : > { %v2271_v56 = vadd.f32 %v2266_v47, %v3793_v6 }
 0x85c   : > { %3287 = vmatpush3.bf16.msra.mxu1 %v3286_v24 }
 0x85d   : > { %v2280_v57 = vsel %vm1064_vm3, %v2271_v56, 0.0 }
 0x85e   : > { %2281 = vadd.xlane.f32.xlu0 %v2280_v57 }
 0x8e3   : > { %v2276_v4 = vpop.xlane.xlu1 %2275 }
 0x8e4   : > { %v2284_v58 = vmul.f32 0.03125, %v2276_v4  ;;  %v2923_v4 = vld [vmem:[%s4272_s12] ss:$0 sm:$0xff] }
 0x8e6   : > { %v2287_v14 = vsub.f32 %v2269_v32, %v2284_v58 }
 0x8e7   : > { %v2279_v16 = vpop.xlane.xlu0 %2278 }
 0x8e8   : > { %v2285_v59 = vmul.f32 0.03125, %v2279_v16  ;;  %v2290_v51 = vmul.f32 %v2287_v14, %v2287_v14 }
 0x8ea   : > { %v2288_v5 = vsub.f32 %v2270_v45, %v2285_v59  ;;  %v2293_v61 = vsel %vm1064_vm3, %v2290_v51, 0.0 }
 0x8eb   : > { %2294 = vadd.xlane.f32.xlu1 %v2293_v61  ;;  %v2282_v55 = vpop.xlane.xlu0 %2281 }
 0x8ec   : > { %v2286_v62 = vmul.f32 0.03125, %v2282_v55  ;;  %v2291_v6 = vmul.f32 %v2288_v5, %v2288_v5 }
 0x8ee   : > { %v2289_v0 = vsub.f32 %v2271_v56, %v2286_v62  ;;  %v2296_v1 = vsel %vm1064_vm3, %v2291_v6, 0.0 }
 0x8ef   : > { %2297 = vadd.xlane.f32.xlu0 %v2296_v1 }
 0x8f0   : > { %v2292_v7 = vmul.f32 %v2289_v0, %v2289_v0 }
 0x8f2   : > { %v2299_v8 = vsel %vm1064_vm3, %v2292_v7, 0.0 }
 0x8f3   : > { %2300 = vadd.xlane.f32.xlu1 %v2299_v8 }
 0x978   : > { %v2295_v22 = vpop.xlane.xlu1 %2294 }
 0x979   : > { %v2302_v3 = vmul.f32 0.03125, %v2295_v22 }
 0x97b   : > { %v2305_v20 = vadd.f32 1e-05, %v2302_v3 }
 0x97c   : > { %v2298_v25 = vpop.xlane.xlu0 %2297 }
 0x97d   : > { %3441 = vrsqrt.f32 %v2305_v20  ;;  %v2303_v26 = vmul.f32 0.03125, %v2298_v25 }
 0x97f   : > { %v2306_v27 = vadd.f32 1e-05, %v2303_v26 }
 0x980   : > { %v2301_v29 = vpop.xlane.xlu1 %2300 }
 0x981   : > { %3443 = vrsqrt.f32 %v2306_v27  ;;  %v2304_v31 = vmul.f32 0.03125, %v2301_v29 }
 0x983   : > { %v2307_v11 = vadd.f32 1e-05, %v2304_v31 }
 0x985   : > { %3445 = vrsqrt.f32 %v2307_v11 }
 0x987   : > { %v3442_v23 = vpop.eup %3441 }
 0x988   : > { %v2311_v63 = vmul.f32 %v3442_v23, %v2287_v14 }
 0x98a   : > { %v2320_v34 = vmul.f32 %v2917_v28, %v2311_v63 }
 0x98b   : > { %v3444_v18 = vpop.eup %3443 }
 0x98c   : > { %v2329_v35 = vadd.f32 %v2918_v33, %v2320_v34  ;;  %v2312_v37 = vmul.f32 %v3444_v18, %v2288_v5 }
 0x98e   : > { %3199 = vmatmul.mubr.msk.f32.vlgmr.msra.gmra.mrb[30].mxu0 %vm1064_vm3, %v2329_v35  ;;  %v2321_v38 = vmul.f32 %v2917_v28, %v2312_v37  ;;  %v2927_v37 = vld [vmem:[%s4273_s1] ss:$0 sm:$0xff] }
 0x98f   : > { %v3446_v39 = vpop.eup %3445  ;;  %3201 = vmatprep.mubr.msk.f32.mxu0 %vm3494_vm2, %v3495_v2 }
 0x990   : > { %v2330_v40 = vadd.f32 %v2918_v33, %v2321_v38  ;;  %v2313_v41 = vmul.f32 %v3446_v39, %v2289_v0  ;;  %v2928_v39 = vld [vmem:[%s4274_s21] ss:$0 sm:$0xff] }
 0x992   : > { %3202 = vmatmul.mubr.msk.f32.gmra.mrb[32].mxu0 %vm1064_vm3, %v2330_v40  ;;  %v2322_v42 = vmul.f32 %v2917_v28, %v2313_v41 }
 0x993   : > { %3204 = vmatprep.mubr.msk.f32.mxu0 %vm3494_vm2, %v3495_v2 }
 0x994   : > { %v2331_v43 = vadd.f32 %v2918_v33, %v2322_v42 }
 0x996   : > { %3205 = vmatmul.mubr.msk.f32.gmra.mrb[34].mxu0 %vm1064_vm3, %v2331_v43 }
 0xa61   : > { %v2418_v32 = vpop.f32.mrb[30].mxu0 }
 0xa62   : > { %v2419_v36 = vadd.f32 %v2919_v48, %v2418_v32  ;;  %v3200_v50 = vpop.f32.mrb[31].mxu0 }
 0xa63   : > { %v2604_v50 = vld [vmem:[%s4276_s3] sm:$0xff] (!%p2929_p8) }
 0xa64   : > { %v2432_v52 = vmax.f32 %v2419_v36, 0.0 }
 0xa65   : > { %v2423_v30 = vpop.f32.mrb[32].mxu0 }
 0xa66   : > { %v2424_v45 = vadd.f32 %v2919_v48, %v2423_v30  ;;  %v3203_v54 = vpop.f32.mrb[33].mxu0  ;;  %3216 = vmatmul.mubr.msk.f32.vlgmr.msra.gmra.mrb[30].mxu1 %vm1064_vm3, %v2432_v52 }
 0xa67   : > { %3218 = vmatprep.mubr.msk.f32.mxu1 %vm3494_vm2, %v3495_v2 }
 0xa68   : > { %v2433_v47 = vmax.f32 %v2424_v45, 0.0  ;;  %v2609_v45 = vld [vmem:[%s4277_s20] sm:$0xff] (!%p2929_p8) }
 0xa69   : > { %v2428_v49 = vpop.f32.mrb[34].mxu0 }
 0xa6a   : > { %v2429_v53 = vadd.f32 %v2919_v48, %v2428_v49  ;;  %v3206_v56 = vpop.f32.mrb[35].mxu0  ;;  %3219 = vmatmul.mubr.msk.f32.gmra.mrb[32].mxu1 %vm1064_vm3, %v2433_v47 }
 0xa6b   : > { %3221 = vmatprep.mubr.msk.f32.mxu1 %vm3494_vm2, %v3495_v2 }
 0xa6c   : > { %v2434_v57 = vmax.f32 %v2429_v53, 0.0 }
 0xa6e   : > { %3222 = vmatmul.mubr.msk.f32.gmra.mrb[34].mxu1 %vm1064_vm3, %v2434_v57 }
 0xb39   : > { %v2521_v58 = vpop.f32.mrb[30].mxu1 }
 0xb3a   : > { %v2522_v14 = vadd.f32 %v2923_v4, %v2521_v58  ;;  %v3217_v16 = vpop.f32.mrb[31].mxu1 }
 0xb3c   : > { %v2535_v59 = vadd.f32 %v2522_v14, %v2329_v35 }
 0xb3d   : > { %v2526_v51 = vpop.f32.mrb[32].mxu1 }
 0xb3e   : > { %v2527_v5 = vadd.f32 %v2923_v4, %v2526_v51  ;;  %v3220_v61 = vpop.f32.mrb[33].mxu1  ;;  %v2540_v55 = vsel %vm1064_vm3, %v2535_v59, 0.0 }
 0xb3f   : > { %2541 = vadd.xlane.f32.xlu0 %v2540_v55 }
 0xb40   : > { %v2536_v62 = vadd.f32 %v2527_v5, %v2330_v40 }
 0xb41   : > { %v2531_v2 = vpop.f32.mrb[34].mxu1 }
 0xb42   : > { %v2532_v6 = vadd.f32 %v2923_v4, %v2531_v2  ;;  %v3223_v0 = vpop.f32.mrb[35].mxu1  ;;  %v2543_v1 = vsel %vm1064_vm3, %v2536_v62, 0.0 }
 0xb43   : > { %2544 = vadd.xlane.f32.xlu1 %v2543_v1 }
 0xb44   : > { %v2537_v7 = vadd.f32 %v2532_v6, %v2331_v43 }
 0xb46   : > { %v2546_v8 = vsel %vm1064_vm3, %v2537_v7, 0.0 }
 0xb47   : > { %2547 = vadd.xlane.f32.xlu0 %v2546_v8 }
 0xbcc   : > { %v2542_v9 = vpop.xlane.xlu0 %2541 }
 0xbcd   : > { %v2549_v60 = vmul.f32 0.03125, %v2542_v9 }
 0xbcf   : > { %v2552_v10 = vsub.f32 %v2535_v59, %v2549_v60 }
 0xbd0   : > { %v2545_v12 = vpop.xlane.xlu1 %2544 }
 0xbd1   : > { %v2550_v13 = vmul.f32 0.03125, %v2545_v12  ;;  %v2555_v17 = vmul.f32 %v2552_v10, %v2552_v10 }
 0xbd3   : > { %v2553_v15 = vsub.f32 %v2536_v62, %v2550_v13  ;;  %v2558_v19 = vsel %vm1064_vm3, %v2555_v17, 0.0 }
 0xbd4   : > { %2559 = vadd.xlane.f32.xlu1 %v2558_v19  ;;  %v2548_v21 = vpop.xlane.xlu0 %2547 }
 0xbd5   : > { %v2551_v22 = vmul.f32 0.03125, %v2548_v21  ;;  %v2556_v3 = vmul.f32 %v2553_v15, %v2553_v15 }
 0xbd7   : > { %v2554_v20 = vsub.f32 %v2537_v7, %v2551_v22  ;;  %v2561_v25 = vsel %vm1064_vm3, %v2556_v3, 0.0 }
 0xbd8   : > { %2562 = vadd.xlane.f32.xlu0 %v2561_v25 }
 0xbd9   : > { %v2557_v26 = vmul.f32 %v2554_v20, %v2554_v20 }
 0xbdb   : > { %v2564_v27 = vsel %vm1064_vm3, %v2557_v26, 0.0 }
 0xbdc   : > { %2565 = vadd.xlane.f32.xlu1 %v2564_v27 }
 0xc61   : > { %v2560_v29 = vpop.xlane.xlu1 %2559 }
 0xc62   : > { %v2567_v31 = vmul.f32 0.03125, %v2560_v29 }
 0xc64   : > { %v2570_v11 = vadd.f32 1e-05, %v2567_v31 }
 0xc65   : > { %v2563_v23 = vpop.xlane.xlu0 %2562 }
 0xc66   : > { %3447 = vrsqrt.f32 %v2570_v11  ;;  %v2568_v28 = vmul.f32 0.03125, %v2563_v23 }
 0xc68   : > { %v2571_v63 = vadd.f32 1e-05, %v2568_v28 }
 0xc69   : > { %v2566_v33 = vpop.xlane.xlu1 %2565 }
 0xc6a   : > { %3449 = vrsqrt.f32 %v2571_v63  ;;  %v2569_v34 = vmul.f32 0.03125, %v2566_v33 }
 0xc6c   : > { %v2572_v18 = vadd.f32 1e-05, %v2569_v34 }
 0xc6e   : > { %3451 = vrsqrt.f32 %v2572_v18 }
 0xc70   : > { %v3448_v35 = vpop.eup %3447 }
 0xc71   : > { %v2576_v38 = vmul.f32 %v3448_v35, %v2552_v10 }
 0xc73   : > { %v2585_v40 = vmul.f32 %v2927_v37, %v2576_v38 }
 0xc74   : > { %v3450_v41 = vpop.eup %3449 }
 0xc75   : > { %v2594_v42 = vadd.f32 %v2928_v39, %v2585_v40  ;;  %v2577_v43 = vmul.f32 %v3450_v41, %v2553_v15 }
 0xc77   : > { %2597 = vst.msk [vmem:[#allocation2] sm:$0xff] %vm1064_vm3, %v2594_v42  ;;  %v2586_v44 = vmul.f32 %v2927_v37, %v2577_v43 }
 0xc78   : > { %v3452_v46 = vpop.eup %3451 }
 0xc79   : > { %v2595_v24 = vadd.f32 %v2928_v39, %v2586_v44  ;;  %v2578_v48 = vmul.f32 %v3452_v46, %v2554_v20  ;;  %2603 = sbr.rel (%p2929_p8) target bundleno = 3347 (0xd13), region = 108 }
 0xc7b   : > { %2598 = vst.msk [vmem:[#allocation2 + $0x8] sm:$0xff] %vm1064_vm3, %v2595_v24  ;;  %v2587_v32 = vmul.f32 %v2927_v37, %v2578_v48 }
 0xc7d   : > { %v2596_v36 = vadd.f32 %v2928_v39, %v2587_v32 }
 0xc7f   : > { %2599 = vst.msk [vmem:[#allocation2 + $0x10] sm:$0xff] %vm1064_vm3, %v2596_v36  ;;  %v2605_v52 = vmul.f32 (!%p2929_p8), %v2604_v50, %v2596_v36 }
 0xc81   : > { %v2606_v30 = vsel %vm1064_vm3, %v2605_v52, 0.0 }
 0xc82   : > { %2607 = vadd.xlane.f32.xlu0 %v2606_v30 }
 0xd0f   : > { %v2608_v54 = vpop.xlane.xlu0 %2607 }
 0xd10   : > { %v2610_v47 = vadd.f32 %v2609_v45, %v2608_v54 }
 0xd12   : > { %2612 = vst.msk [vmem:[%s3717_s19] sm:$0xff] %vm2611_vm8, %v2610_v47 }
 0xd13 PF: > { %s4278_s22 = sld [smem:[#allocation6_spill]]  ;;  %s4279_s2 = sld [smem:[#allocation4_spill]] }
 0xd14   : > { %s4280_s25 = sld [smem:[#allocation5_spill]]  ;;  %s4281_s26 = sld [smem:[#allocation7_spill]] }
 0xd15   : > { %s4282_s27 = sld [smem:[#allocation8_spill]] }
 0xd19   : > { %s32_s3 = sadd.s32 1, %s4278_s22  }
 0xd1a   : > { %p29_p9 = scmp.ge.s32.totalorder %s32_s3, 8  }
 0xd1c   :  { %31 = sbr.rel (!%p29_p9) target bundleno = 16 (0x10), region = 186 }

</bundles_post_ra>
